<compile_context>
chip_gen: v7x
topology: tpu7x:2x2x1
jax: 0.10.0
libtpu: 0.0.40
codegen_flags: <defaults>
</compile_context>

<pallas_src>
import functools
import math

import jax
import jax.numpy as jnp
from jax.experimental import pallas as pl
from jax.experimental.pallas import tpu as pltpu

LANE = 128                                   # lane-dense output width (full vreg lanes)
_BN_SCALE = 1.0 / math.sqrt(1.0 + 1e-5)      # eval-mode BatchNorm1d with default stats


def _rup(n, m=8):
    return ((n + m - 1) // m) * m


def _apply_act(x, act):
    if act == "relu":
        return jnp.maximum(x, 0.0)
    if act == "tanh":
        return jnp.tanh(x)
    return x


# -------------------------------------------------------------------------
# Pallas kernels (single invocation, whole arrays resident in VMEM)
# -------------------------------------------------------------------------
def _gcn_block_kernel(agg_ref, x_ref, w1_ref, b1_ref, w2_ref, b2_ref, o_ref,
                      *, final_act):
    # Fused GCNBlock(block_depth=2, norm=False): conv -> relu -> conv [-> final_act]
    # conv(X) = Agg @ (X @ W) + b.  Weights pre-padded to 128 output lanes, so the
    # intermediate h and the output store are both lane-dense; padded lanes stay 0.
    agg = agg_ref[...]
    xw = jnp.dot(x_ref[...], w1_ref[...], preferred_element_type=jnp.float32)
    h = jnp.maximum(
        jnp.dot(agg, xw, preferred_element_type=jnp.float32) + b1_ref[...], 0.0)
    hw = jnp.dot(h, w2_ref[...], preferred_element_type=jnp.float32)
    out = jnp.dot(agg, hw, preferred_element_type=jnp.float32) + b2_ref[...]
    o_ref[...] = _apply_act(out, final_act)


def _mlp_kernel(*refs, n_layers, final_act, bn_scale):
    # Fused gnn.MLP(num_layers=4, plain_last=True): (Linear->BN(eval)->ReLU) x3 -> Linear
    x_ref, o_ref = refs[0], refs[-1]
    wb = refs[1:-1]
    h = x_ref[...]
    for li in range(n_layers):
        w_ref, b_ref = wb[2 * li], wb[2 * li + 1]
        h = jnp.dot(h, w_ref[...], preferred_element_type=jnp.float32) + b_ref[...]
        if li < n_layers - 1:
            h = jnp.maximum(h * bn_scale, 0.0)
    o_ref[...] = _apply_act(h, final_act)


def _augment_adj_kernel(adj_ref, o_ref):
    # remove_self_loops -> add_self_loops -> A @ A -> remove_self_loops, all fused.
    a = adj_ref[...]
    n = a.shape[0]
    row = jax.lax.broadcasted_iota(jnp.int32, (n, n), 0)
    col = jax.lax.broadcasted_iota(jnp.int32, (n, n), 1)
    eye = row == col
    a = jnp.where(eye, 1.0, a)
    a2 = jnp.dot(a, a, preferred_element_type=jnp.float32)
    o_ref[...] = jnp.where(eye, 0.0, a2)


def _call_vmem(kernel, out_shape, *args):
    # Whole-array VMEM refs, grid=() -> no pipeline / double-buffer scaffolding.
    return pl.pallas_call(
        kernel,
        out_shape=out_shape,
        in_specs=[pl.BlockSpec(memory_space=pltpu.MemorySpace.VMEM) for _ in args],
        out_specs=pl.BlockSpec(memory_space=pltpu.MemorySpace.VMEM),
    )(*args)


# -------------------------------------------------------------------------
# Kernel wrappers
# -------------------------------------------------------------------------
def gcn_block(x, agg_pad, n, block_params, cout, final_act="none"):
    """One fused GCNBlock; agg_pad is the already-padded normalized aggregation matrix."""
    w1p, b1p, w2p, b2p = block_params
    npad = agg_pad.shape[0]
    x_pad = jnp.pad(x, ((0, npad - n), (0, 0)))
    out = _call_vmem(
        functools.partial(_gcn_block_kernel, final_act=final_act),
        jax.ShapeDtypeStruct((npad, LANE), jnp.float32),
        agg_pad, x_pad, w1p, b1p, w2p, b2p,
    )
    return out[:n, :cout]


def mlp(x, params, cout, final_act="none"):
    n = x.shape[0]
    npad = _rup(n)
    x_pad = jnp.pad(x, ((0, npad - n), (0, 0)))
    flat = [t for wb in params for t in wb]
    out = _call_vmem(
        functools.partial(_mlp_kernel, n_layers=len(params),
                          final_act=final_act, bn_scale=_BN_SCALE),
        jax.ShapeDtypeStruct((npad, LANE), jnp.float32),
        x_pad, *flat,
    )
    return out[:n, :cout]


def augment_adj(adj):
    n = adj.shape[0]
    npad = _rup(n)
    adj_pad = jnp.pad(adj, ((0, npad - n), (0, npad - n)))
    out = _call_vmem(
        _augment_adj_kernel,
        jax.ShapeDtypeStruct((npad, npad), jnp.float32),
        adj_pad,
    )
    return out[:n, :n]


# -------------------------------------------------------------------------
# Graph glue (plain JAX): normalization, TopK pooling
# -------------------------------------------------------------------------
def gcn_agg_matrix(adj):
    """gcn_norm with add_remaining_self_loops; returns Agg[t, s] so out = Agg @ (XW)."""
    diag = jnp.diagonal(adj)
    new_diag = jnp.where(diag == 0.0, 1.0, diag)          # add *remaining* self loops
    a = adj - jnp.diag(diag) + jnp.diag(new_diag)         # a[s, t]
    deg = a.sum(axis=0)                                   # in-degree at target (>= 1)
    dis = jax.lax.rsqrt(deg)
    norm = dis[:, None] * a * dis[None, :]                # norm[s, t]
    return norm.T                                         # Agg[t, s]


def pad_agg(agg):
    n = agg.shape[0]
    npad = _rup(n)
    return jnp.pad(agg, ((0, npad - n), (0, npad - n)))


def topk_pool(x, adj, p_weight, ratio=0.5):
    """TopKPooling(ratio=0.5, nonlinearity=tanh, multiplier=1). Data-dependent: plain JAX."""
    n = x.shape[0]
    k = int(math.ceil(ratio * n))
    score = jnp.tanh((x * p_weight[None, :]).sum(-1) / jnp.linalg.norm(p_weight))
    _, perm = jax.lax.top_k(score, k)
    x_new = x[perm] * score[perm][:, None]
    adj_new = adj[perm][:, perm]
    return x_new, adj_new, perm


# -------------------------------------------------------------------------
# Model
# -------------------------------------------------------------------------
def graph_unet(x, adj, params, hidden, out_channels, final_act="none"):
    """GraphUNetv2 forward, depth=4, pool_ratios=0.5, sum_res=False."""
    depth = len(params["pool"])
    n0 = x.shape[0]
    agg0 = pad_agg(gcn_agg_matrix(adj))
    x = gcn_block(x, agg0, n0, params["down"][0], hidden, final_act="relu")
    xs, aggs, perms = [x], [agg0], []
    cur_adj = adj
    for i in range(1, depth + 1):
        cur_adj = augment_adj(cur_adj)
        x, cur_adj, perm = topk_pool(x, cur_adj, params["pool"][i - 1], ratio=0.5)
        n_i = x.shape[0]
        agg_i = pad_agg(gcn_agg_matrix(cur_adj))          # computed & padded once per level
        x = gcn_block(x, agg_i, n_i, params["down"][i], hidden, final_act="relu")
        if i < depth:
            xs.append(x)
            aggs.append(agg_i)                            # reused by the matching up block
        perms.append(perm)
    for i in range(depth):
        j = depth - 1 - i
        res, perm, agg_j = xs[j], perms[j], aggs[j]
        up = jnp.zeros_like(res).at[perm].set(x)
        x = jnp.concatenate([res, up], axis=-1)           # sum_res=False -> concat
        cout_i = hidden if i < depth - 1 else out_channels
        act_i = "relu" if i < depth - 1 else final_act
        x = gcn_block(x, agg_j, res.shape[0], params["up"][i], cout_i, final_act=act_i)
    return x


def recurrent_formulation_net(F_0, adj, meshfield, params, *,
                              n_time=1, hidden=16, latent=8, n_field=3):
    mesh_latent = graph_unet(meshfield, adj, params["mesh"], hidden, latent,
                             final_act="tanh")
    Fs, F_dots = [], []
    F_cur = F_0
    # NOTE: at small n_time a Python loop is fine; switch to lax.scan if n_time grows.
    for _ in range(n_time):
        # time is None / use_time_feature=False branch
        x = jnp.concatenate([F_cur, mesh_latent], axis=1)
        F_dot = graph_unet(x, adj, params["diff"], hidden, n_field, final_act="tanh")
        x = jnp.concatenate([F_cur, F_dot], axis=-1)
        F_next = mlp(x, params["integrator"], n_field, final_act="tanh")
        Fs.append(F_next[:, None, :])
        F_dots.append(F_dot[:, None, :])
        F_cur = F_next                                     # .detach(): no-op for inference
    return jnp.concatenate(Fs, axis=1), jnp.concatenate(F_dots, axis=1)


# -------------------------------------------------------------------------
# Deterministic parameter construction (+ offline lane-dense padding)
# -------------------------------------------------------------------------
def _glorot(key, shape):
    fan_in, fan_out = shape
    lim = math.sqrt(6.0 / (fan_in + fan_out))
    return jax.random.uniform(key, shape, jnp.float32, -lim, lim)


def make_gcn_block_params(key, cin, cout):
    k1, k2 = jax.random.split(key)
    return (
        _glorot(k1, (cin, cout)), jnp.zeros((cout,), jnp.float32),
        _glorot(k2, (cout, cout)), jnp.zeros((cout,), jnp.float32),
    )


def make_unet_params(key, cin, hidden, cout, depth=4):
    keys = iter(jax.random.split(key, 4 * depth + 8))
    down = [make_gcn_block_params(next(keys), cin, hidden)]
    pool = []
    for _ in range(depth):
        pool.append(jax.random.normal(next(keys), (hidden,), jnp.float32))
        down.append(make_gcn_block_params(next(keys), hidden, hidden))
    up = [make_gcn_block_params(next(keys), 2 * hidden, hidden) for _ in range(depth - 1)]
    up.append(make_gcn_block_params(next(keys), 2 * hidden, cout))
    return {"down": down, "pool": pool, "up": up}


def make_mlp_params(key, channel_list):
    keys = jax.random.split(key, len(channel_list) - 1)
    return [
        (_glorot(k, (ci, co)), jnp.zeros((co,), jnp.float32))
        for k, ci, co in zip(keys, channel_list[:-1], channel_list[1:])
    ]


def _pad_w(w, rows, cols=LANE):
    return jnp.pad(w, ((0, rows - w.shape[0]), (0, cols - w.shape[1])))


def _pad_b(b, cols=LANE):
    return jnp.pad(b, (0, cols - b.shape[0])).reshape(1, cols)


def pad_gcn_block_params(p):
    w1, b1, w2, b2 = p
    # w1 rows stay at the true input channel count (x is unpadded in lanes);
    # all output columns padded to 128 lanes; w2 rows padded to match the 128-lane h.
    return (_pad_w(w1, w1.shape[0]), _pad_b(b1), _pad_w(w2, LANE), _pad_b(b2))


def pad_unet_params(p):
    return {
        "down": [pad_gcn_block_params(bp) for bp in p["down"]],
        "pool": p["pool"],
        "up": [pad_gcn_block_params(bp) for bp in p["up"]],
    }


def pad_mlp_params(params):
    padded = []
    for li, (w, b) in enumerate(params):
        rows = w.shape[0] if li == 0 else LANE
        padded.append((_pad_w(w, rows), _pad_b(b)))
    return padded


# -------------------------------------------------------------------------
# Main
# -------------------------------------------------------------------------
if __name__ == "__main__":
    N = 32                      # nodes (pools: 32 -> 16 -> 8 -> 4 -> 2)
    n_field, n_meshfield = 3, 4
    hidden, latent = 16, 8
    n_time = 2

    key = jax.random.PRNGKey(0)
    k_f0, k_mesh, k_md, k_df, k_int, k_edge = jax.random.split(key, 6)

    F_0 = jax.random.normal(k_f0, (N, n_field), jnp.float32)
    meshfield = jax.random.normal(k_mesh, (N, n_meshfield), jnp.float32)

    # Build edge_index: bidirectional ring + chords (no self loops), then dense adjacency.
    src = jnp.arange(N)
    dst = (src + 1) % N
    extra_src = jax.random.randint(k_edge, (16,), 0, N)
    extra_dst = (extra_src + 5) % N
    edge_index = jnp.stack([
        jnp.concatenate([src, dst, extra_src]),
        jnp.concatenate([dst, src, extra_dst]),
    ])
    adj = jnp.zeros((N, N), jnp.float32).at[edge_index[0], edge_index[1]].set(1.0)
    adj = adj * (1.0 - jnp.eye(N, dtype=jnp.float32))

    raw_params = {
        "mesh": make_unet_params(k_md, n_meshfield, hidden, latent, depth=4),
        "diff": make_unet_params(k_df, n_field + latent, hidden, n_field, depth=4),
        "integrator": make_mlp_params(k_int, [2 * n_field, hidden, hidden, hidden, n_field]),
    }
    # Lane-dense padding of weights is done once, outside jit.
    params = {
        "mesh": pad_unet_params(raw_params["mesh"]),
        "diff": pad_unet_params(raw_params["diff"]),
        "integrator": pad_mlp_params(raw_params["integrator"]),
    }

    fwd = jax.jit(functools.partial(
        recurrent_formulation_net,
        n_time=n_time, hidden=hidden, latent=latent, n_field=n_field))
    Fs, F_dots = fwd(F_0, adj, meshfield, params)
    jax.block_until_ready((Fs, F_dots))

    assert Fs.shape == (N, n_time, n_field)
    assert F_dots.shape == (N, n_time, n_field)
    assert bool(jnp.all(jnp.isfinite(Fs))) and bool(jnp.all(jnp.isfinite(F_dots)))
    print("KERNEL_OK")
</pallas_src>

<mosaic_0001>
module attributes {stable_mosaic.version = 11 : i64} {
  func.func @_gcn_block_kernel(%arg0: memref<32x32xf32, #tpu.memory_space<vmem>>, %arg1: memref<32x4xf32, #tpu.memory_space<vmem>>, %arg2: memref<4x128xf32, #tpu.memory_space<vmem>>, %arg3: memref<1x128xf32, #tpu.memory_space<vmem>>, %arg4: memref<128x128xf32, #tpu.memory_space<vmem>>, %arg5: memref<1x128xf32, #tpu.memory_space<vmem>>, %arg6: memref<32x128xf32, #tpu.memory_space<vmem>>) attributes {dimension_semantics = [], scalar_prefetch = 0 : i64, scratch_operands = 0 : i64, tpu.core_type = #tpu.core_type<tc>} {
    %c0 = arith.constant 0 : index
    %c0_0 = arith.constant 0 : index
    %0 = vector.load %arg0[%c0, %c0_0] : memref<32x32xf32, #tpu.memory_space<vmem>>, vector<32x32xf32>
    %c0_1 = arith.constant 0 : index
    %c0_2 = arith.constant 0 : index
    %1 = vector.load %arg1[%c0_1, %c0_2] : memref<32x4xf32, #tpu.memory_space<vmem>>, vector<32x4xf32>
    %c0_3 = arith.constant 0 : index
    %c0_4 = arith.constant 0 : index
    %2 = vector.load %arg2[%c0_3, %c0_4] : memref<4x128xf32, #tpu.memory_space<vmem>>, vector<4x128xf32>
    %cst = arith.constant dense<0.000000e+00> : vector<32x128xf32>
    %3 = tpu.matmul %1, %2, %cst {dimension_numbers = #tpu.dot_dimension_numbers<[1], [0], [0], [1], [0, 0, 1, 1], [], []>} : vector<32x4xf32>, vector<4x128xf32>, vector<32x128xf32> -> vector<32x128xf32>
    %cst_5 = arith.constant dense<0.000000e+00> : vector<32x128xf32>
    %4 = tpu.matmul %0, %3, %cst_5 {dimension_numbers = #tpu.dot_dimension_numbers<[1], [0], [0], [1], [0, 0, 1, 1], [], []>} : vector<32x32xf32>, vector<32x128xf32>, vector<32x128xf32> -> vector<32x128xf32>
    %c0_6 = arith.constant 0 : index
    %c0_7 = arith.constant 0 : index
    %5 = vector.load %arg3[%c0_6, %c0_7] : memref<1x128xf32, #tpu.memory_space<vmem>>, vector<1x128xf32>
    %6 = vector.broadcast %5 : vector<1x128xf32> to vector<32x128xf32>
    %7 = arith.addf %4, %6 : vector<32x128xf32>
    %cst_8 = arith.constant 0.000000e+00 : f32
    %8 = vector.broadcast %cst_8 : f32 to vector<32x128xf32>
    %9 = arith.maximumf %7, %8 : vector<32x128xf32>
    %c0_9 = arith.constant 0 : index
    %c0_10 = arith.constant 0 : index
    %10 = vector.load %arg4[%c0_9, %c0_10] : memref<128x128xf32, #tpu.memory_space<vmem>>, vector<128x128xf32>
    %cst_11 = arith.constant dense<0.000000e+00> : vector<32x128xf32>
    %11 = tpu.matmul %9, %10, %cst_11 {dimension_numbers = #tpu.dot_dimension_numbers<[1], [0], [0], [1], [0, 0, 1, 1], [], []>} : vector<32x128xf32>, vector<128x128xf32>, vector<32x128xf32> -> vector<32x128xf32>
    %cst_12 = arith.constant dense<0.000000e+00> : vector<32x128xf32>
    %12 = tpu.matmul %0, %11, %cst_12 {dimension_numbers = #tpu.dot_dimension_numbers<[1], [0], [0], [1], [0, 0, 1, 1], [], []>} : vector<32x32xf32>, vector<32x128xf32>, vector<32x128xf32> -> vector<32x128xf32>
    %c0_13 = arith.constant 0 : index
    %c0_14 = arith.constant 0 : index
    %13 = vector.load %arg5[%c0_13, %c0_14] : memref<1x128xf32, #tpu.memory_space<vmem>>, vector<1x128xf32>
    %14 = vector.broadcast %13 : vector<1x128xf32> to vector<32x128xf32>
    %15 = arith.addf %12, %14 : vector<32x128xf32>
    %cst_15 = arith.constant 0.000000e+00 : f32
    %16 = vector.broadcast %cst_15 : f32 to vector<32x128xf32>
    %17 = arith.maximumf %15, %16 : vector<32x128xf32>
    %c0_16 = arith.constant 0 : index
    %c0_17 = arith.constant 0 : index
    %18 = vector.load %arg6[%c0_16, %c0_17] : memref<32x128xf32, #tpu.memory_space<vmem>>, vector<32x128xf32>
    tpu.vector_store %arg6[%c0_16, %c0_17], %17 {strides = array<i32>} : memref<32x128xf32, #tpu.memory_space<vmem>>, vector<32x128xf32>,
    return
  }
}

module attributes {stable_mosaic.version = 11 : i64} {
  func.func @_augment_adj_kernel(%arg0: memref<32x32xf32, #tpu.memory_space<vmem>>, %arg1: memref<32x32xf32, #tpu.memory_space<vmem>>) attributes {dimension_semantics = [], scalar_prefetch = 0 : i64, scratch_operands = 0 : i64, tpu.core_type = #tpu.core_type<tc>} {
    %c0 = arith.constant 0 : index
    %c0_0 = arith.constant 0 : index
    %0 = vector.load %arg0[%c0, %c0_0] : memref<32x32xf32, #tpu.memory_space<vmem>>, vector<32x32xf32>
    %1 = tpu.iota {dimensions = array<i32: 0>} : vector<32x32xi32>
    %2 = tpu.iota {dimensions = array<i32: 1>} : vector<32x32xi32>
    %3 = arith.cmpi eq, %1, %2 : vector<32x32xi32>
    %cst = arith.constant 1.000000e+00 : f32
    %4 = vector.broadcast %cst : f32 to vector<32x32xf32>
    %5 = arith.select %3, %4, %0 : vector<32x32xi1>, vector<32x32xf32>
    %cst_1 = arith.constant dense<0.000000e+00> : vector<32x32xf32>
    %6 = tpu.matmul %5, %5, %cst_1 {dimension_numbers = #tpu.dot_dimension_numbers<[1], [0], [0], [1], [0, 0, 1, 1], [], []>} : vector<32x32xf32>, vector<32x32xf32>, vector<32x32xf32> -> vector<32x32xf32>
    %cst_2 = arith.constant 0.000000e+00 : f32
    %7 = vector.broadcast %cst_2 : f32 to vector<32x32xf32>
    %8 = arith.select %3, %7, %6 : vector<32x32xi1>, vector<32x32xf32>
    %c0_3 = arith.constant 0 : index
    %c0_4 = arith.constant 0 : index
    %9 = vector.load %arg1[%c0_3, %c0_4] : memref<32x32xf32, #tpu.memory_space<vmem>>, vector<32x32xf32>
    tpu.vector_store %arg1[%c0_3, %c0_4], %8 {strides = array<i32>} : memref<32x32xf32, #tpu.memory_space<vmem>>, vector<32x32xf32>,
    return
  }
}

module attributes {stable_mosaic.version = 11 : i64} {
  func.func @_gcn_block_kernel(%arg0: memref<16x16xf32, #tpu.memory_space<vmem>>, %arg1: memref<16x16xf32, #tpu.memory_space<vmem>>, %arg2: memref<16x128xf32, #tpu.memory_space<vmem>>, %arg3: memref<1x128xf32, #tpu.memory_space<vmem>>, %arg4: memref<128x128xf32, #tpu.memory_space<vmem>>, %arg5: memref<1x128xf32, #tpu.memory_space<vmem>>, %arg6: memref<16x128xf32, #tpu.memory_space<vmem>>) attributes {dimension_semantics = [], scalar_prefetch = 0 : i64, scratch_operands = 0 : i64, tpu.core_type = #tpu.core_type<tc>} {
    %c0 = arith.constant 0 : index
    %c0_0 = arith.constant 0 : index
    %0 = vector.load %arg0[%c0, %c0_0] : memref<16x16xf32, #tpu.memory_space<vmem>>, vector<16x16xf32>
    %c0_1 = arith.constant 0 : index
    %c0_2 = arith.constant 0 : index
    %1 = vector.load %arg1[%c0_1, %c0_2] : memref<16x16xf32, #tpu.memory_space<vmem>>, vector<16x16xf32>
    %c0_3 = arith.constant 0 : index
    %c0_4 = arith.constant 0 : index
    %2 = vector.load %arg2[%c0_3, %c0_4] : memref<16x128xf32, #tpu.memory_space<vmem>>, vector<16x128xf32>
    %cst = arith.constant dense<0.000000e+00> : vector<16x128xf32>
    %3 = tpu.matmul %1, %2, %cst {dimension_numbers = #tpu.dot_dimension_numbers<[1], [0], [0], [1], [0, 0, 1, 1], [], []>} : vector<16x16xf32>, vector<16x128xf32>, vector<16x128xf32> -> vector<16x128xf32>
    %cst_5 = arith.constant dense<0.000000e+00> : vector<16x128xf32>
    %4 = tpu.matmul %0, %3, %cst_5 {dimension_numbers = #tpu.dot_dimension_numbers<[1], [0], [0], [1], [0, 0, 1, 1], [], []>} : vector<16x16xf32>, vector<16x128xf32>, vector<16x128xf32> -> vector<16x128xf32>
    %c0_6 = arith.constant 0 : index
    %c0_7 = arith.constant 0 : index
    %5 = vector.load %arg3[%c0_6, %c0_7] : memref<1x128xf32, #tpu.memory_space<vmem>>, vector<1x128xf32>
    %6 = vector.broadcast %5 : vector<1x128xf32> to vector<16x128xf32>
    %7 = arith.addf %4, %6 : vector<16x128xf32>
    %cst_8 = arith.constant 0.000000e+00 : f32
    %8 = vector.broadcast %cst_8 : f32 to vector<16x128xf32>
    %9 = arith.maximumf %7, %8 : vector<16x128xf32>
    %c0_9 = arith.constant 0 : index
    %c0_10 = arith.constant 0 : index
    %10 = vector.load %arg4[%c0_9, %c0_10] : memref<128x128xf32, #tpu.memory_space<vmem>>, vector<128x128xf32>
    %cst_11 = arith.constant dense<0.000000e+00> : vector<16x128xf32>
    %11 = tpu.matmul %9, %10, %cst_11 {dimension_numbers = #tpu.dot_dimension_numbers<[1], [0], [0], [1], [0, 0, 1, 1], [], []>} : vector<16x128xf32>, vector<128x128xf32>, vector<16x128xf32> -> vector<16x128xf32>
    %cst_12 = arith.constant dense<0.000000e+00> : vector<16x128xf32>
    %12 = tpu.matmul %0, %11, %cst_12 {dimension_numbers = #tpu.dot_dimension_numbers<[1], [0], [0], [1], [0, 0, 1, 1], [], []>} : vector<16x16xf32>, vector<16x128xf32>, vector<16x128xf32> -> vector<16x128xf32>
    %c0_13 = arith.constant 0 : index
    %c0_14 = arith.constant 0 : index
    %13 = vector.load %arg5[%c0_13, %c0_14] : memref<1x128xf32, #tpu.memory_space<vmem>>, vector<1x128xf32>
    %14 = vector.broadcast %13 : vector<1x128xf32> to vector<16x128xf32>
    %15 = arith.addf %12, %14 : vector<16x128xf32>
    %cst_15 = arith.constant 0.000000e+00 : f32
    %16 = vector.broadcast %cst_15 : f32 to vector<16x128xf32>
    %17 = arith.maximumf %15, %16 : vector<16x128xf32>
    %c0_16 = arith.constant 0 : index
    %c0_17 = arith.constant 0 : index
    %18 = vector.load %arg6[%c0_16, %c0_17] : memref<16x128xf32, #tpu.memory_space<vmem>>, vector<16x128xf32>
    tpu.vector_store %arg6[%c0_16, %c0_17], %17 {strides = array<i32>} : memref<16x128xf32, #tpu.memory_space<vmem>>, vector<16x128xf32>,
    return
  }
}

module attributes {stable_mosaic.version = 11 : i64} {
  func.func @_augment_adj_kernel(%arg0: memref<16x16xf32, #tpu.memory_space<vmem>>, %arg1: memref<16x16xf32, #tpu.memory_space<vmem>>) attributes {dimension_semantics = [], scalar_prefetch = 0 : i64, scratch_operands = 0 : i64, tpu.core_type = #tpu.core_type<tc>} {
    %c0 = arith.constant 0 : index
    %c0_0 = arith.constant 0 : index
    %0 = vector.load %arg0[%c0, %c0_0] : memref<16x16xf32, #tpu.memory_space<vmem>>, vector<16x16xf32>
    %1 = tpu.iota {dimensions = array<i32: 0>} : vector<16x16xi32>
    %2 = tpu.iota {dimensions = array<i32: 1>} : vector<16x16xi32>
    %3 = arith.cmpi eq, %1, %2 : vector<16x16xi32>
    %cst = arith.constant 1.000000e+00 : f32
    %4 = vector.broadcast %cst : f32 to vector<16x16xf32>
    %5 = arith.select %3, %4, %0 : vector<16x16xi1>, vector<16x16xf32>
    %cst_1 = arith.constant dense<0.000000e+00> : vector<16x16xf32>
    %6 = tpu.matmul %5, %5, %cst_1 {dimension_numbers = #tpu.dot_dimension_numbers<[1], [0], [0], [1], [0, 0, 1, 1], [], []>} : vector<16x16xf32>, vector<16x16xf32>, vector<16x16xf32> -> vector<16x16xf32>
    %cst_2 = arith.constant 0.000000e+00 : f32
    %7 = vector.broadcast %cst_2 : f32 to vector<16x16xf32>
    %8 = arith.select %3, %7, %6 : vector<16x16xi1>, vector<16x16xf32>
    %c0_3 = arith.constant 0 : index
    %c0_4 = arith.constant 0 : index
    %9 = vector.load %arg1[%c0_3, %c0_4] : memref<16x16xf32, #tpu.memory_space<vmem>>, vector<16x16xf32>
    tpu.vector_store %arg1[%c0_3, %c0_4], %8 {strides = array<i32>} : memref<16x16xf32, #tpu.memory_space<vmem>>, vector<16x16xf32>,
    return
  }
}

module attributes {stable_mosaic.version = 11 : i64} {
  func.func @_gcn_block_kernel(%arg0: memref<8x8xf32, #tpu.memory_space<vmem>>, %arg1: memref<8x16xf32, #tpu.memory_space<vmem>>, %arg2: memref<16x128xf32, #tpu.memory_space<vmem>>, %arg3: memref<1x128xf32, #tpu.memory_space<vmem>>, %arg4: memref<128x128xf32, #tpu.memory_space<vmem>>, %arg5: memref<1x128xf32, #tpu.memory_space<vmem>>, %arg6: memref<8x128xf32, #tpu.memory_space<vmem>>) attributes {dimension_semantics = [], scalar_prefetch = 0 : i64, scratch_operands = 0 : i64, tpu.core_type = #tpu.core_type<tc>} {
    %c0 = arith.constant 0 : index
    %c0_0 = arith.constant 0 : index
    %0 = vector.load %arg0[%c0, %c0_0] : memref<8x8xf32, #tpu.memory_space<vmem>>, vector<8x8xf32>
    %c0_1 = arith.constant 0 : index
    %c0_2 = arith.constant 0 : index
    %1 = vector.load %arg1[%c0_1, %c0_2] : memref<8x16xf32, #tpu.memory_space<vmem>>, vector<8x16xf32>
    %c0_3 = arith.constant 0 : index
    %c0_4 = arith.constant 0 : index
    %2 = vector.load %arg2[%c0_3, %c0_4] : memref<16x128xf32, #tpu.memory_space<vmem>>, vector<16x128xf32>
    %cst = arith.constant dense<0.000000e+00> : vector<8x128xf32>
    %3 = tpu.matmul %1, %2, %cst {dimension_numbers = #tpu.dot_dimension_numbers<[1], [0], [0], [1], [0, 0, 1, 1], [], []>} : vector<8x16xf32>, vector<16x128xf32>, vector<8x128xf32> -> vector<8x128xf32>
    %cst_5 = arith.constant dense<0.000000e+00> : vector<8x128xf32>
    %4 = tpu.matmul %0, %3, %cst_5 {dimension_numbers = #tpu.dot_dimension_numbers<[1], [0], [0], [1], [0, 0, 1, 1], [], []>} : vector<8x8xf32>, vector<8x128xf32>, vector<8x128xf32> -> vector<8x128xf32>
    %c0_6 = arith.constant 0 : index
    %c0_7 = arith.constant 0 : index
    %5 = vector.load %arg3[%c0_6, %c0_7] : memref<1x128xf32, #tpu.memory_space<vmem>>, vector<1x128xf32>
    %6 = vector.broadcast %5 : vector<1x128xf32> to vector<8x128xf32>
    %7 = arith.addf %4, %6 : vector<8x128xf32>
    %cst_8 = arith.constant 0.000000e+00 : f32
    %8 = vector.broadcast %cst_8 : f32 to vector<8x128xf32>
    %9 = arith.maximumf %7, %8 : vector<8x128xf32>
    %c0_9 = arith.constant 0 : index
    %c0_10 = arith.constant 0 : index
    %10 = vector.load %arg4[%c0_9, %c0_10] : memref<128x128xf32, #tpu.memory_space<vmem>>, vector<128x128xf32>
    %cst_11 = arith.constant dense<0.000000e+00> : vector<8x128xf32>
    %11 = tpu.matmul %9, %10, %cst_11 {dimension_numbers = #tpu.dot_dimension_numbers<[1], [0], [0], [1], [0, 0, 1, 1], [], []>} : vector<8x128xf32>, vector<128x128xf32>, vector<8x128xf32> -> vector<8x128xf32>
    %cst_12 = arith.constant dense<0.000000e+00> : vector<8x128xf32>
    %12 = tpu.matmul %0, %11, %cst_12 {dimension_numbers = #tpu.dot_dimension_numbers<[1], [0], [0], [1], [0, 0, 1, 1], [], []>} : vector<8x8xf32>, vector<8x128xf32>, vector<8x128xf32> -> vector<8x128xf32>
    %c0_13 = arith.constant 0 : index
    %c0_14 = arith.constant 0 : index
    %13 = vector.load %arg5[%c0_13, %c0_14] : memref<1x128xf32, #tpu.memory_space<vmem>>, vector<1x128xf32>
    %14 = vector.broadcast %13 : vector<1x128xf32> to vector<8x128xf32>
    %15 = arith.addf %12, %14 : vector<8x128xf32>
    %cst_15 = arith.constant 0.000000e+00 : f32
    %16 = vector.broadcast %cst_15 : f32 to vector<8x128xf32>
    %17 = arith.maximumf %15, %16 : vector<8x128xf32>
    %c0_16 = arith.constant 0 : index
    %c0_17 = arith.constant 0 : index
    %18 = vector.load %arg6[%c0_16, %c0_17] : memref<8x128xf32, #tpu.memory_space<vmem>>, vector<8x128xf32>
    tpu.vector_store %arg6[%c0_16, %c0_17], %17 {strides = array<i32>} : memref<8x128xf32, #tpu.memory_space<vmem>>, vector<8x128xf32>,
    return
  }
}

module attributes {stable_mosaic.version = 11 : i64} {
  func.func @_augment_adj_kernel(%arg0: memref<8x8xf32, #tpu.memory_space<vmem>>, %arg1: memref<8x8xf32, #tpu.memory_space<vmem>>) attributes {dimension_semantics = [], scalar_prefetch = 0 : i64, scratch_operands = 0 : i64, tpu.core_type = #tpu.core_type<tc>} {
    %c0 = arith.constant 0 : index
    %c0_0 = arith.constant 0 : index
    %0 = vector.load %arg0[%c0, %c0_0] : memref<8x8xf32, #tpu.memory_space<vmem>>, vector<8x8xf32>
    %1 = tpu.iota {dimensions = array<i32: 0>} : vector<8x8xi32>
    %2 = tpu.iota {dimensions = array<i32: 1>} : vector<8x8xi32>
    %3 = arith.cmpi eq, %1, %2 : vector<8x8xi32>
    %cst = arith.constant 1.000000e+00 : f32
    %4 = vector.broadcast %cst : f32 to vector<8x8xf32>
    %5 = arith.select %3, %4, %0 : vector<8x8xi1>, vector<8x8xf32>
    %cst_1 = arith.constant dense<0.000000e+00> : vector<8x8xf32>
    %6 = tpu.matmul %5, %5, %cst_1 {dimension_numbers = #tpu.dot_dimension_numbers<[1], [0], [0], [1], [0, 0, 1, 1], [], []>} : vector<8x8xf32>, vector<8x8xf32>, vector<8x8xf32> -> vector<8x8xf32>
    %cst_2 = arith.constant 0.000000e+00 : f32
    %7 = vector.broadcast %cst_2 : f32 to vector<8x8xf32>
    %8 = arith.select %3, %7, %6 : vector<8x8xi1>, vector<8x8xf32>
    %c0_3 = arith.constant 0 : index
    %c0_4 = arith.constant 0 : index
    %9 = vector.load %arg1[%c0_3, %c0_4] : memref<8x8xf32, #tpu.memory_space<vmem>>, vector<8x8xf32>
    tpu.vector_store %arg1[%c0_3, %c0_4], %8 {strides = array<i32>} : memref<8x8xf32, #tpu.memory_space<vmem>>, vector<8x8xf32>,
    return
  }
}

module attributes {stable_mosaic.version = 11 : i64} {
  func.func @_gcn_block_kernel(%arg0: memref<8x8xf32, #tpu.memory_space<vmem>>, %arg1: memref<8x32xf32, #tpu.memory_space<vmem>>, %arg2: memref<32x128xf32, #tpu.memory_space<vmem>>, %arg3: memref<1x128xf32, #tpu.memory_space<vmem>>, %arg4: memref<128x128xf32, #tpu.memory_space<vmem>>, %arg5: memref<1x128xf32, #tpu.memory_space<vmem>>, %arg6: memref<8x128xf32, #tpu.memory_space<vmem>>) attributes {dimension_semantics = [], scalar_prefetch = 0 : i64, scratch_operands = 0 : i64, tpu.core_type = #tpu.core_type<tc>} {
    %c0 = arith.constant 0 : index
    %c0_0 = arith.constant 0 : index
    %0 = vector.load %arg0[%c0, %c0_0] : memref<8x8xf32, #tpu.memory_space<vmem>>, vector<8x8xf32>
    %c0_1 = arith.constant 0 : index
    %c0_2 = arith.constant 0 : index
    %1 = vector.load %arg1[%c0_1, %c0_2] : memref<8x32xf32, #tpu.memory_space<vmem>>, vector<8x32xf32>
    %c0_3 = arith.constant 0 : index
    %c0_4 = arith.constant 0 : index
    %2 = vector.load %arg2[%c0_3, %c0_4] : memref<32x128xf32, #tpu.memory_space<vmem>>, vector<32x128xf32>
    %cst = arith.constant dense<0.000000e+00> : vector<8x128xf32>
    %3 = tpu.matmul %1, %2, %cst {dimension_numbers = #tpu.dot_dimension_numbers<[1], [0], [0], [1], [0, 0, 1, 1], [], []>} : vector<8x32xf32>, vector<32x128xf32>, vector<8x128xf32> -> vector<8x128xf32>
    %cst_5 = arith.constant dense<0.000000e+00> : vector<8x128xf32>
    %4 = tpu.matmul %0, %3, %cst_5 {dimension_numbers = #tpu.dot_dimension_numbers<[1], [0], [0], [1], [0, 0, 1, 1], [], []>} : vector<8x8xf32>, vector<8x128xf32>, vector<8x128xf32> -> vector<8x128xf32>
    %c0_6 = arith.constant 0 : index
    %c0_7 = arith.constant 0 : index
    %5 = vector.load %arg3[%c0_6, %c0_7] : memref<1x128xf32, #tpu.memory_space<vmem>>, vector<1x128xf32>
    %6 = vector.broadcast %5 : vector<1x128xf32> to vector<8x128xf32>
    %7 = arith.addf %4, %6 : vector<8x128xf32>
    %cst_8 = arith.constant 0.000000e+00 : f32
    %8 = vector.broadcast %cst_8 : f32 to vector<8x128xf32>
    %9 = arith.maximumf %7, %8 : vector<8x128xf32>
    %c0_9 = arith.constant 0 : index
    %c0_10 = arith.constant 0 : index
    %10 = vector.load %arg4[%c0_9, %c0_10] : memref<128x128xf32, #tpu.memory_space<vmem>>, vector<128x128xf32>
    %cst_11 = arith.constant dense<0.000000e+00> : vector<8x128xf32>
    %11 = tpu.matmul %9, %10, %cst_11 {dimension_numbers = #tpu.dot_dimension_numbers<[1], [0], [0], [1], [0, 0, 1, 1], [], []>} : vector<8x128xf32>, vector<128x128xf32>, vector<8x128xf32> -> vector<8x128xf32>
    %cst_12 = arith.constant dense<0.000000e+00> : vector<8x128xf32>
    %12 = tpu.matmul %0, %11, %cst_12 {dimension_numbers = #tpu.dot_dimension_numbers<[1], [0], [0], [1], [0, 0, 1, 1], [], []>} : vector<8x8xf32>, vector<8x128xf32>, vector<8x128xf32> -> vector<8x128xf32>
    %c0_13 = arith.constant 0 : index
    %c0_14 = arith.constant 0 : index
    %13 = vector.load %arg5[%c0_13, %c0_14] : memref<1x128xf32, #tpu.memory_space<vmem>>, vector<1x128xf32>
    %14 = vector.broadcast %13 : vector<1x128xf32> to vector<8x128xf32>
    %15 = arith.addf %12, %14 : vector<8x128xf32>
    %cst_15 = arith.constant 0.000000e+00 : f32
    %16 = vector.broadcast %cst_15 : f32 to vector<8x128xf32>
    %17 = arith.maximumf %15, %16 : vector<8x128xf32>
    %c0_16 = arith.constant 0 : index
    %c0_17 = arith.constant 0 : index
    %18 = vector.load %arg6[%c0_16, %c0_17] : memref<8x128xf32, #tpu.memory_space<vmem>>, vector<8x128xf32>
    tpu.vector_store %arg6[%c0_16, %c0_17], %17 {strides = array<i32>} : memref<8x128xf32, #tpu.memory_space<vmem>>, vector<8x128xf32>,
    return
  }
}

module attributes {stable_mosaic.version = 11 : i64} {
  func.func @_gcn_block_kernel(%arg0: memref<16x16xf32, #tpu.memory_space<vmem>>, %arg1: memref<16x32xf32, #tpu.memory_space<vmem>>, %arg2: memref<32x128xf32, #tpu.memory_space<vmem>>, %arg3: memref<1x128xf32, #tpu.memory_space<vmem>>, %arg4: memref<128x128xf32, #tpu.memory_space<vmem>>, %arg5: memref<1x128xf32, #tpu.memory_space<vmem>>, %arg6: memref<16x128xf32, #tpu.memory_space<vmem>>) attributes {dimension_semantics = [], scalar_prefetch = 0 : i64, scratch_operands = 0 : i64, tpu.core_type = #tpu.core_type<tc>} {
    %c0 = arith.constant 0 : index
    %c0_0 = arith.constant 0 : index
    %0 = vector.load %arg0[%c0, %c0_0] : memref<16x16xf32, #tpu.memory_space<vmem>>, vector<16x16xf32>
    %c0_1 = arith.constant 0 : index
    %c0_2 = arith.constant 0 : index
    %1 = vector.load %arg1[%c0_1, %c0_2] : memref<16x32xf32, #tpu.memory_space<vmem>>, vector<16x32xf32>
    %c0_3 = arith.constant 0 : index
    %c0_4 = arith.constant 0 : index
    %2 = vector.load %arg2[%c0_3, %c0_4] : memref<32x128xf32, #tpu.memory_space<vmem>>, vector<32x128xf32>
    %cst = arith.constant dense<0.000000e+00> : vector<16x128xf32>
    %3 = tpu.matmul %1, %2, %cst {dimension_numbers = #tpu.dot_dimension_numbers<[1], [0], [0], [1], [0, 0, 1, 1], [], []>} : vector<16x32xf32>, vector<32x128xf32>, vector<16x128xf32> -> vector<16x128xf32>
    %cst_5 = arith.constant dense<0.000000e+00> : vector<16x128xf32>
    %4 = tpu.matmul %0, %3, %cst_5 {dimension_numbers = #tpu.dot_dimension_numbers<[1], [0], [0], [1], [0, 0, 1, 1], [], []>} : vector<16x16xf32>, vector<16x128xf32>, vector<16x128xf32> -> vector<16x128xf32>
    %c0_6 = arith.constant 0 : index
    %c0_7 = arith.constant 0 : index
    %5 = vector.load %arg3[%c0_6, %c0_7] : memref<1x128xf32, #tpu.memory_space<vmem>>, vector<1x128xf32>
    %6 = vector.broadcast %5 : vector<1x128xf32> to vector<16x128xf32>
    %7 = arith.addf %4, %6 : vector<16x128xf32>
    %cst_8 = arith.constant 0.000000e+00 : f32
    %8 = vector.broadcast %cst_8 : f32 to vector<16x128xf32>
    %9 = arith.maximumf %7, %8 : vector<16x128xf32>
    %c0_9 = arith.constant 0 : index
    %c0_10 = arith.constant 0 : index
    %10 = vector.load %arg4[%c0_9, %c0_10] : memref<128x128xf32, #tpu.memory_space<vmem>>, vector<128x128xf32>
    %cst_11 = arith.constant dense<0.000000e+00> : vector<16x128xf32>
    %11 = tpu.matmul %9, %10, %cst_11 {dimension_numbers = #tpu.dot_dimension_numbers<[1], [0], [0], [1], [0, 0, 1, 1], [], []>} : vector<16x128xf32>, vector<128x128xf32>, vector<16x128xf32> -> vector<16x128xf32>
    %cst_12 = arith.constant dense<0.000000e+00> : vector<16x128xf32>
    %12 = tpu.matmul %0, %11, %cst_12 {dimension_numbers = #tpu.dot_dimension_numbers<[1], [0], [0], [1], [0, 0, 1, 1], [], []>} : vector<16x16xf32>, vector<16x128xf32>, vector<16x128xf32> -> vector<16x128xf32>
    %c0_13 = arith.constant 0 : index
    %c0_14 = arith.constant 0 : index
    %13 = vector.load %arg5[%c0_13, %c0_14] : memref<1x128xf32, #tpu.memory_space<vmem>>, vector<1x128xf32>
    %14 = vector.broadcast %13 : vector<1x128xf32> to vector<16x128xf32>
    %15 = arith.addf %12, %14 : vector<16x128xf32>
    %cst_15 = arith.constant 0.000000e+00 : f32
    %16 = vector.broadcast %cst_15 : f32 to vector<16x128xf32>
    %17 = arith.maximumf %15, %16 : vector<16x128xf32>
    %c0_16 = arith.constant 0 : index
    %c0_17 = arith.constant 0 : index
    %18 = vector.load %arg6[%c0_16, %c0_17] : memref<16x128xf32, #tpu.memory_space<vmem>>, vector<16x128xf32>
    tpu.vector_store %arg6[%c0_16, %c0_17], %17 {strides = array<i32>} : memref<16x128xf32, #tpu.memory_space<vmem>>, vector<16x128xf32>,
    return
  }
}

module attributes {stable_mosaic.version = 11 : i64} {
  func.func @_gcn_block_kernel(%arg0: memref<32x32xf32, #tpu.memory_space<vmem>>, %arg1: memref<32x32xf32, #tpu.memory_space<vmem>>, %arg2: memref<32x128xf32, #tpu.memory_space<vmem>>, %arg3: memref<1x128xf32, #tpu.memory_space<vmem>>, %arg4: memref<128x128xf32, #tpu.memory_space<vmem>>, %arg5: memref<1x128xf32, #tpu.memory_space<vmem>>, %arg6: memref<32x128xf32, #tpu.memory_space<vmem>>) attributes {dimension_semantics = [], scalar_prefetch = 0 : i64, scratch_operands = 0 : i64, tpu.core_type = #tpu.core_type<tc>} {
    %c0 = arith.constant 0 : index
    %c0_0 = arith.constant 0 : index
    %0 = vector.load %arg0[%c0, %c0_0] : memref<32x32xf32, #tpu.memory_space<vmem>>, vector<32x32xf32>
    %c0_1 = arith.constant 0 : index
    %c0_2 = arith.constant 0 : index
    %1 = vector.load %arg1[%c0_1, %c0_2] : memref<32x32xf32, #tpu.memory_space<vmem>>, vector<32x32xf32>
    %c0_3 = arith.constant 0 : index
    %c0_4 = arith.constant 0 : index
    %2 = vector.load %arg2[%c0_3, %c0_4] : memref<32x128xf32, #tpu.memory_space<vmem>>, vector<32x128xf32>
    %cst = arith.constant dense<0.000000e+00> : vector<32x128xf32>
    %3 = tpu.matmul %1, %2, %cst {dimension_numbers = #tpu.dot_dimension_numbers<[1], [0], [0], [1], [0, 0, 1, 1], [], []>} : vector<32x32xf32>, vector<32x128xf32>, vector<32x128xf32> -> vector<32x128xf32>
    %cst_5 = arith.constant dense<0.000000e+00> : vector<32x128xf32>
    %4 = tpu.matmul %0, %3, %cst_5 {dimension_numbers = #tpu.dot_dimension_numbers<[1], [0], [0], [1], [0, 0, 1, 1], [], []>} : vector<32x32xf32>, vector<32x128xf32>, vector<32x128xf32> -> vector<32x128xf32>
    %c0_6 = arith.constant 0 : index
    %c0_7 = arith.constant 0 : index
    %5 = vector.load %arg3[%c0_6, %c0_7] : memref<1x128xf32, #tpu.memory_space<vmem>>, vector<1x128xf32>
    %6 = vector.broadcast %5 : vector<1x128xf32> to vector<32x128xf32>
    %7 = arith.addf %4, %6 : vector<32x128xf32>
    %cst_8 = arith.constant 0.000000e+00 : f32
    %8 = vector.broadcast %cst_8 : f32 to vector<32x128xf32>
    %9 = arith.maximumf %7, %8 : vector<32x128xf32>
    %c0_9 = arith.constant 0 : index
    %c0_10 = arith.constant 0 : index
    %10 = vector.load %arg4[%c0_9, %c0_10] : memref<128x128xf32, #tpu.memory_space<vmem>>, vector<128x128xf32>
    %cst_11 = arith.constant dense<0.000000e+00> : vector<32x128xf32>
    %11 = tpu.matmul %9, %10, %cst_11 {dimension_numbers = #tpu.dot_dimension_numbers<[1], [0], [0], [1], [0, 0, 1, 1], [], []>} : vector<32x128xf32>, vector<128x128xf32>, vector<32x128xf32> -> vector<32x128xf32>
    %cst_12 = arith.constant dense<0.000000e+00> : vector<32x128xf32>
    %12 = tpu.matmul %0, %11, %cst_12 {dimension_numbers = #tpu.dot_dimension_numbers<[1], [0], [0], [1], [0, 0, 1, 1], [], []>} : vector<32x32xf32>, vector<32x128xf32>, vector<32x128xf32> -> vector<32x128xf32>
    %c0_13 = arith.constant 0 : index
    %c0_14 = arith.constant 0 : index
    %13 = vector.load %arg5[%c0_13, %c0_14] : memref<1x128xf32, #tpu.memory_space<vmem>>, vector<1x128xf32>
    %14 = vector.broadcast %13 : vector<1x128xf32> to vector<32x128xf32>
    %15 = arith.addf %12, %14 : vector<32x128xf32>
    %16 = math.tanh %15 : vector<32x128xf32>
    %c0_15 = arith.constant 0 : index
    %c0_16 = arith.constant 0 : index
    %17 = vector.load %arg6[%c0_15, %c0_16] : memref<32x128xf32, #tpu.memory_space<vmem>>, vector<32x128xf32>
    tpu.vector_store %arg6[%c0_15, %c0_16], %16 {strides = array<i32>} : memref<32x128xf32, #tpu.memory_space<vmem>>, vector<32x128xf32>,
    return
  }
}

module attributes {stable_mosaic.version = 11 : i64} {
  func.func @_gcn_block_kernel(%arg0: memref<32x32xf32, #tpu.memory_space<vmem>>, %arg1: memref<32x11xf32, #tpu.memory_space<vmem>>, %arg2: memref<11x128xf32, #tpu.memory_space<vmem>>, %arg3: memref<1x128xf32, #tpu.memory_space<vmem>>, %arg4: memref<128x128xf32, #tpu.memory_space<vmem>>, %arg5: memref<1x128xf32, #tpu.memory_space<vmem>>, %arg6: memref<32x128xf32, #tpu.memory_space<vmem>>) attributes {dimension_semantics = [], scalar_prefetch = 0 : i64, scratch_operands = 0 : i64, tpu.core_type = #tpu.core_type<tc>} {
    %c0 = arith.constant 0 : index
    %c0_0 = arith.constant 0 : index
    %0 = vector.load %arg0[%c0, %c0_0] : memref<32x32xf32, #tpu.memory_space<vmem>>, vector<32x32xf32>
    %c0_1 = arith.constant 0 : index
    %c0_2 = arith.constant 0 : index
    %1 = vector.load %arg1[%c0_1, %c0_2] : memref<32x11xf32, #tpu.memory_space<vmem>>, vector<32x11xf32>
    %c0_3 = arith.constant 0 : index
    %c0_4 = arith.constant 0 : index
    %2 = vector.load %arg2[%c0_3, %c0_4] : memref<11x128xf32, #tpu.memory_space<vmem>>, vector<11x128xf32>
    %cst = arith.constant dense<0.000000e+00> : vector<32x128xf32>
    %3 = tpu.matmul %1, %2, %cst {dimension_numbers = #tpu.dot_dimension_numbers<[1], [0], [0], [1], [0, 0, 1, 1], [], []>} : vector<32x11xf32>, vector<11x128xf32>, vector<32x128xf32> -> vector<32x128xf32>
    %cst_5 = arith.constant dense<0.000000e+00> : vector<32x128xf32>
    %4 = tpu.matmul %0, %3, %cst_5 {dimension_numbers = #tpu.dot_dimension_numbers<[1], [0], [0], [1], [0, 0, 1, 1], [], []>} : vector<32x32xf32>, vector<32x128xf32>, vector<32x128xf32> -> vector<32x128xf32>
    %c0_6 = arith.constant 0 : index
    %c0_7 = arith.constant 0 : index
    %5 = vector.load %arg3[%c0_6, %c0_7] : memref<1x128xf32, #tpu.memory_space<vmem>>, vector<1x128xf32>
    %6 = vector.broadcast %5 : vector<1x128xf32> to vector<32x128xf32>
    %7 = arith.addf %4, %6 : vector<32x128xf32>
    %cst_8 = arith.constant 0.000000e+00 : f32
    %8 = vector.broadcast %cst_8 : f32 to vector<32x128xf32>
    %9 = arith.maximumf %7, %8 : vector<32x128xf32>
    %c0_9 = arith.constant 0 : index
    %c0_10 = arith.constant 0 : index
    %10 = vector.load %arg4[%c0_9, %c0_10] : memref<128x128xf32, #tpu.memory_space<vmem>>, vector<128x128xf32>
    %cst_11 = arith.constant dense<0.000000e+00> : vector<32x128xf32>
    %11 = tpu.matmul %9, %10, %cst_11 {dimension_numbers = #tpu.dot_dimension_numbers<[1], [0], [0], [1], [0, 0, 1, 1], [], []>} : vector<32x128xf32>, vector<128x128xf32>, vector<32x128xf32> -> vector<32x128xf32>
    %cst_12 = arith.constant dense<0.000000e+00> : vector<32x128xf32>
    %12 = tpu.matmul %0, %11, %cst_12 {dimension_numbers = #tpu.dot_dimension_numbers<[1], [0], [0], [1], [0, 0, 1, 1], [], []>} : vector<32x32xf32>, vector<32x128xf32>, vector<32x128xf32> -> vector<32x128xf32>
    %c0_13 = arith.constant 0 : index
    %c0_14 = arith.constant 0 : index
    %13 = vector.load %arg5[%c0_13, %c0_14] : memref<1x128xf32, #tpu.memory_space<vmem>>, vector<1x128xf32>
    %14 = vector.broadcast %13 : vector<1x128xf32> to vector<32x128xf32>
    %15 = arith.addf %12, %14 : vector<32x128xf32>
    %cst_15 = arith.constant 0.000000e+00 : f32
    %16 = vector.broadcast %cst_15 : f32 to vector<32x128xf32>
    %17 = arith.maximumf %15, %16 : vector<32x128xf32>
    %c0_16 = arith.constant 0 : index
    %c0_17 = arith.constant 0 : index
    %18 = vector.load %arg6[%c0_16, %c0_17] : memref<32x128xf32, #tpu.memory_space<vmem>>, vector<32x128xf32>
    tpu.vector_store %arg6[%c0_16, %c0_17], %17 {strides = array<i32>} : memref<32x128xf32, #tpu.memory_space<vmem>>, vector<32x128xf32>,
    return
  }
}

module attributes {stable_mosaic.version = 11 : i64} {
  func.func @_mlp_kernel(%arg0: memref<32x6xf32, #tpu.memory_space<vmem>>, %arg1: memref<6x128xf32, #tpu.memory_space<vmem>>, %arg2: memref<1x128xf32, #tpu.memory_space<vmem>>, %arg3: memref<128x128xf32, #tpu.memory_space<vmem>>, %arg4: memref<1x128xf32, #tpu.memory_space<vmem>>, %arg5: memref<128x128xf32, #tpu.memory_space<vmem>>, %arg6: memref<1x128xf32, #tpu.memory_space<vmem>>, %arg7: memref<128x128xf32, #tpu.memory_space<vmem>>, %arg8: memref<1x128xf32, #tpu.memory_space<vmem>>, %arg9: memref<32x128xf32, #tpu.memory_space<vmem>>) attributes {dimension_semantics = [], scalar_prefetch = 0 : i64, scratch_operands = 0 : i64, tpu.core_type = #tpu.core_type<tc>} {
    %c0 = arith.constant 0 : index
    %c0_0 = arith.constant 0 : index
    %0 = vector.load %arg0[%c0, %c0_0] : memref<32x6xf32, #tpu.memory_space<vmem>>, vector<32x6xf32>
    %c0_1 = arith.constant 0 : index
    %c0_2 = arith.constant 0 : index
    %1 = vector.load %arg1[%c0_1, %c0_2] : memref<6x128xf32, #tpu.memory_space<vmem>>, vector<6x128xf32>
    %cst = arith.constant dense<0.000000e+00> : vector<32x128xf32>
    %2 = tpu.matmul %0, %1, %cst {dimension_numbers = #tpu.dot_dimension_numbers<[1], [0], [0], [1], [0, 0, 1, 1], [], []>} : vector<32x6xf32>, vector<6x128xf32>, vector<32x128xf32> -> vector<32x128xf32>
    %c0_3 = arith.constant 0 : index
    %c0_4 = arith.constant 0 : index
    %3 = vector.load %arg2[%c0_3, %c0_4] : memref<1x128xf32, #tpu.memory_space<vmem>>, vector<1x128xf32>
    %4 = vector.broadcast %3 : vector<1x128xf32> to vector<32x128xf32>
    %5 = arith.addf %2, %4 : vector<32x128xf32>
    %cst_5 = arith.constant 0.999994993 : f32
    %6 = vector.broadcast %cst_5 : f32 to vector<32x128xf32>
    %7 = arith.mulf %5, %6 : vector<32x128xf32>
    %cst_6 = arith.constant 0.000000e+00 : f32
    %8 = vector.broadcast %cst_6 : f32 to vector<32x128xf32>
    %9 = arith.maximumf %7, %8 : vector<32x128xf32>
    %c0_7 = arith.constant 0 : index
    %c0_8 = arith.constant 0 : index
    %10 = vector.load %arg3[%c0_7, %c0_8] : memref<128x128xf32, #tpu.memory_space<vmem>>, vector<128x128xf32>
    %cst_9 = arith.constant dense<0.000000e+00> : vector<32x128xf32>
    %11 = tpu.matmul %9, %10, %cst_9 {dimension_numbers = #tpu.dot_dimension_numbers<[1], [0], [0], [1], [0, 0, 1, 1], [], []>} : vector<32x128xf32>, vector<128x128xf32>, vector<32x128xf32> -> vector<32x128xf32>
    %c0_10 = arith.constant 0 : index
    %c0_11 = arith.constant 0 : index
    %12 = vector.load %arg4[%c0_10, %c0_11] : memref<1x128xf32, #tpu.memory_space<vmem>>, vector<1x128xf32>
    %13 = vector.broadcast %12 : vector<1x128xf32> to vector<32x128xf32>
    %14 = arith.addf %11, %13 : vector<32x128xf32>
    %cst_12 = arith.constant 0.999994993 : f32
    %15 = vector.broadcast %cst_12 : f32 to vector<32x128xf32>
    %16 = arith.mulf %14, %15 : vector<32x128xf32>
    %cst_13 = arith.constant 0.000000e+00 : f32
    %17 = vector.broadcast %cst_13 : f32 to vector<32x128xf32>
    %18 = arith.maximumf %16, %17 : vector<32x128xf32>
    %c0_14 = arith.constant 0 : index
    %c0_15 = arith.constant 0 : index
    %19 = vector.load %arg5[%c0_14, %c0_15] : memref<128x128xf32, #tpu.memory_space<vmem>>, vector<128x128xf32>
    %cst_16 = arith.constant dense<0.000000e+00> : vector<32x128xf32>
    %20 = tpu.matmul %18, %19, %cst_16 {dimension_numbers = #tpu.dot_dimension_numbers<[1], [0], [0], [1], [0, 0, 1, 1], [], []>} : vector<32x128xf32>, vector<128x128xf32>, vector<32x128xf32> -> vector<32x128xf32>
    %c0_17 = arith.constant 0 : index
    %c0_18 = arith.constant 0 : index
    %21 = vector.load %arg6[%c0_17, %c0_18] : memref<1x128xf32, #tpu.memory_space<vmem>>, vector<1x128xf32>
    %22 = vector.broadcast %21 : vector<1x128xf32> to vector<32x128xf32>
    %23 = arith.addf %20, %22 : vector<32x128xf32>
    %cst_19 = arith.constant 0.999994993 : f32
    %24 = vector.broadcast %cst_19 : f32 to vector<32x128xf32>
    %25 = arith.mulf %23, %24 : vector<32x128xf32>
    %cst_20 = arith.constant 0.000000e+00 : f32
    %26 = vector.broadcast %cst_20 : f32 to vector<32x128xf32>
    %27 = arith.maximumf %25, %26 : vector<32x128xf32>
    %c0_21 = arith.constant 0 : index
    %c0_22 = arith.constant 0 : index
    %28 = vector.load %arg7[%c0_21, %c0_22] : memref<128x128xf32, #tpu.memory_space<vmem>>, vector<128x128xf32>
    %cst_23 = arith.constant dense<0.000000e+00> : vector<32x128xf32>
    %29 = tpu.matmul %27, %28, %cst_23 {dimension_numbers = #tpu.dot_dimension_numbers<[1], [0], [0], [1], [0, 0, 1, 1], [], []>} : vector<32x128xf32>, vector<128x128xf32>, vector<32x128xf32> -> vector<32x128xf32>
    %c0_24 = arith.constant 0 : index
    %c0_25 = arith.constant 0 : index
    %30 = vector.load %arg8[%c0_24, %c0_25] : memref<1x128xf32, #tpu.memory_space<vmem>>, vector<1x128xf32>
    %31 = vector.broadcast %30 : vector<1x128xf32> to vector<32x128xf32>
    %32 = arith.addf %29, %31 : vector<32x128xf32>
    %33 = math.tanh %32 : vector<32x128xf32>
    %c0_26 = arith.constant 0 : index
    %c0_27 = arith.constant 0 : index
    %34 = vector.load %arg9[%c0_26, %c0_27] : memref<32x128xf32, #tpu.memory_space<vmem>>, vector<32x128xf32>
    tpu.vector_store %arg9[%c0_26, %c0_27], %33 {strides = array<i32>} : memref<32x128xf32, #tpu.memory_space<vmem>>, vector<32x128xf32>,
    return
  }
}

</mosaic_0001>

<bundles_post_ra>
// kernel: recurrent_formulation_net.42
= control target key start
LH: loop header
LB: loop body
LE: loop exit
PB: predicated region body
PF: predicated region fallthrough
CT: control target
= control target key end

     0   :  { %v12_v0 = vlaneseq  ;;  %vm27_vm0 = vcmask 261120   ;;  %s225_s0 = inlined_call_operand.vmem [shape: f32[32,32], index: 0, kind: input, shape index: {}]   ;;  %s226_s1 = inlined_call_operand.vmem [shape: f32[32,32], index: 1, kind: output, shape index: {}]  }
   0x1   :  { %v8_v1 = vld [vmem:[%s225_s0] sm:$0xff]  ;;  %v9_v4 = vld [vmem:[%s225_s0 + $0x8] sm:$0xff]  ;;  %v10_v6 = vld [vmem:[%s225_s0 + $0x10] sm:$0xff] }
   0x2   :  { %v13_v2 = vshrl.u32 %v12_v0, 7  ;;  %v18_v3 = vand.u32 127, %v12_v0  ;;  %v11_v7 = vld [vmem:[%s225_s0 + $0x18] sm:$0xff] }
   0x4   :  { %v14_v5 = vadd.s32 8, %v13_v2  ;;  %vm19_vm1 = vcmp.eq.s32.totalorder %v13_v2, %v18_v3  ;;  %v15_v8 = vadd.s32 16, %v13_v2  ;;  %v16_v9 = vadd.s32 24, %v13_v2 }
   0x5   :  { %v23_v10 = vsel %vm19_vm1, 1.0, %v8_v1 }
   0x6   :  { %vm20_vm2 = vcmp.eq.s32.totalorder %v14_v5, %v18_v3  ;;  %vm21_vm3 = vcmp.eq.s32.totalorder %v15_v8, %v18_v3  ;;  %vm22_vm4 = vcmp.eq.s32.totalorder %v16_v9, %v18_v3  ;;  %157 = vmatprep.mubr.msk.f32.mxu0 %vm27_vm0, %v23_v10 }
   0x7   :  { %v24_v11 = vsel %vm20_vm2, 1.0, %v9_v4  ;;  %v25_v12 = vsel %vm21_vm3, 1.0, %v10_v6  ;;  %v26_v13 = vsel %vm22_vm4, 1.0, %v11_v7 }
   0x8   :  { %v163_v14 = vpack.c.bf16 %v24_v11, %v23_v10  ;;  %v167_v15 = vpack.c.bf16 %v26_v13, %v25_v12  ;;  %160 = vmatprep.mubr.msk.f32.mxu1 %vm27_vm0, %v25_v12 }
   0xa   :  { %164 = vmatprep.subr.bf16.mxu0 %v163_v14  ;;  %171 = vmatprep.subr.bf16.mxu1 %v163_v14 }
   0xb   :  { %166 = vmatpush3.bf16.msra.mxu0 %v163_v14  ;;  %173 = vmatpush3.bf16.msra.mxu1 %v163_v14 }
   0xc   :  { %168 = vmatprep.subr.bf16.mxu0 %v167_v15  ;;  %172 = vmatprep.subr.bf16.mxu1 %v167_v15 }
   0xf   :  { %170 = vmatpush3.bf16.msra.mxu0 %v167_v15  ;;  %174 = vmatpush3.bf16.msra.mxu1 %v167_v15 }
  0x12   :  { %158 = vmatmul.mubr.msk.f32.vlgmr.msra.gmra.mrb[0].mxu0 %vm27_vm0, %v24_v11  ;;  %161 = vmatmul.mubr.msk.f32.vlgmr.msra.gmra.mrb[0].mxu1 %vm27_vm0, %v26_v13 }
  0xe5   :  { %v159_v16 = vpop.f32.mrb[0].mxu0  ;;  %v162_v17 = vpop.f32.mrb[0].mxu1 }
  0xe6   :  { %v126_v18 = vsel %vm20_vm2, 0.0, %v159_v16  ;;  %v128_v19 = vsel %vm22_vm4, 0.0, %v162_v17  ;;  %v106_v20 = vpop.f32.mrb[1].mxu0  ;;  %v116_v21 = vpop.f32.mrb[1].mxu1 }
  0xe7   :  { %130 = vst.msk [vmem:[%s226_s1 + $0x8] sm:$0xff] %vm27_vm0, %v126_v18  ;;  %132 = vst.msk [vmem:[%s226_s1 + $0x18] sm:$0xff] %vm27_vm0, %v128_v19  ;;  %v125_v22 = vsel %vm19_vm1, 0.0, %v106_v20  ;;  %v127_v23 = vsel %vm21_vm3, 0.0, %v116_v21 }
  0xe8   :  { %129 = vst.msk [vmem:[%s226_s1] sm:$0xff] %vm27_vm0, %v125_v22  ;;  %131 = vst.msk [vmem:[%s226_s1 + $0x10] sm:$0xff] %vm27_vm0, %v127_v23 }

// kernel: recurrent_formulation_net.41
= control target key start
LH: loop header
LB: loop body
LE: loop exit
PB: predicated region body
PF: predicated region fallthrough
CT: control target
= control target key end

     0   :  { %vm45_vm0 = vcmask 1043456   ;;  %vm32_vm1 = vcmask 31744   ;;  %vm141_vm2 = vcmask 261120   ;;  %s762_s2 = inlined_call_operand.vmem [shape: f32[4,128], index: 2, kind: input, shape index: {}]   ;;  %s763_s1 = inlined_call_operand.vmem [shape: f32[32,4], index: 1, kind: input, shape index: {}]   ;;  %s764_s0 = inlined_call_operand.vmem [shape: f32[32,32], index: 0, kind: input, shape index: {}]   ;;  %s765_s4 = inlined_call_operand.vmem [shape: f32[128,128], index: 4, kind: input, shape index: {}]   ;;  %s766_s3 = inlined_call_operand.vmem [shape: f32[1,128], index: 3, kind: input, shape index: {}]   ;;  %s767_s5 = inlined_call_operand.vmem [shape: f32[1,128], index: 5, kind: input, shape index: {}]   ;;  %s768_s6 = inlined_call_operand.vmem [shape: f32[32,128], index: 6, kind: output, shape index: {}]  }
   0x1   :  { %v31_v0 = vld [vmem:[%s762_s2] sm:$0xf]  ;;  %v28_v2 = vld [vmem:[%s763_s1 + $0x8] sm:$0xff]  ;;  %v29_v3 = vld [vmem:[%s763_s1 + $0x10] sm:$0xff] }
   0x2   :  { %v27_v1 = vld [vmem:[%s763_s1] sm:$0xff]  ;;  %504 = vmatprep.subr.msk.mxu1 %vm45_vm0, %v31_v0  ;;  %v30_v4 = vld [vmem:[%s763_s1 + $0x18] sm:$0xff]  ;;  %v244_v7 = vld [vmem:[%s765_s4 + $0x8] sm:$0xff] }
   0x3   :  { %506 = vmatprep.mubr.msk.f32.mxu1 %vm32_vm1, %v27_v1  ;;  %505 = vmatpush3.msk.msra.mxu1 %vm45_vm0, %v31_v0  ;;  %v23_v5 = vld [vmem:[%s764_s0] sm:$0xff]  ;;  %v245_v8 = vld [vmem:[%s765_s4 + $0x10] sm:$0xff]  ;;  %v246_v10 = vld [vmem:[%s765_s4 + $0x18] sm:$0xff] }
   0x4   :  { %507 = vmatmul.mubr.msk.f32.vlgmr.msra.gmra.mrb[0].mxu1 %vm32_vm1, %v28_v2  ;;  %v243_v6 = vld [vmem:[%s765_s4] sm:$0xff]  ;;  %v590_v11 = vpack.c.bf16 %v246_v10, %v245_v8  ;;  %v248_v13 = vld [vmem:[%s765_s4 + $0x28] sm:$0xff]  ;;  %v249_v15 = vld [vmem:[%s765_s4 + $0x30] sm:$0xff] }
   0x5   :  { %509 = vmatprep.mubr.msk.f32.mxu1 %vm32_vm1, %v29_v3  ;;  %v586_v9 = vpack.c.bf16 %v244_v7, %v243_v6  ;;  %v247_v12 = vld [vmem:[%s765_s4 + $0x20] sm:$0xff]  ;;  %v250_v16 = vld [vmem:[%s765_s4 + $0x38] sm:$0xff]  ;;  %v252_v19 = vld [vmem:[%s765_s4 + $0x48] sm:$0xff] }
   0x6   :  { %v594_v14 = vpack.c.bf16 %v248_v13, %v247_v12  ;;  %v598_v17 = vpack.c.bf16 %v250_v16, %v249_v15  ;;  %v251_v18 = vld [vmem:[%s765_s4 + $0x40] sm:$0xff]  ;;  %v253_v21 = vld [vmem:[%s765_s4 + $0x50] sm:$0xff]  ;;  %v254_v22 = vld [vmem:[%s765_s4 + $0x58] sm:$0xff] }
   0x7   :  { %587 = vmatprep.subr.bf16.mxu0 %v586_v9  ;;  %v602_v20 = vpack.c.bf16 %v252_v19, %v251_v18  ;;  %v606_v23 = vpack.c.bf16 %v254_v22, %v253_v21  ;;  %v255_v24 = vld [vmem:[%s765_s4 + $0x60] sm:$0xff]  ;;  %v256_v25 = vld [vmem:[%s765_s4 + $0x68] sm:$0xff]  ;;  %v25_v34 = vld [vmem:[%s764_s0 + $0x10] sm:$0xff] }
   0x8   :  { %510 = vmatmul.mubr.msk.f32.gmra.mrb[2].mxu1 %vm32_vm1, %v30_v4  ;;  %589 = vmatpush3.bf16.msra.mxu0 %v586_v9  ;;  %v610_v26 = vpack.c.bf16 %v256_v25, %v255_v24  ;;  %v24_v33 = vld [vmem:[%s764_s0 + $0x8] sm:$0xff]  ;;  %v26_v35 = vld [vmem:[%s764_s0 + $0x18] sm:$0xff]  ;;  %v257_v36 = vld [vmem:[%s765_s4 + $0x70] sm:$0xff] }
   0x9   :  { %520 = vmatprep.mubr.msk.f32.mxu1 %vm141_vm2, %v23_v5  ;;  %591 = vmatprep.subr.bf16.mxu0 %v590_v11  ;;  %v258_v37 = vld [vmem:[%s765_s4 + $0x78] sm:$0xff]  ;;  %v453_v39 = vld [vmem:[%s766_s3] ss:$0 sm:$0xff] }
   0xa   :  { %v614_v38 = vpack.c.bf16 %v258_v37, %v257_v36  ;;  %v458_v58 = vld [vmem:[%s767_s5] ss:$0 sm:$0xff] }
   0xc   :  { %593 = vmatpush3.bf16.msra.mxu0 %v590_v11 }
   0xd   :  { %595 = vmatprep.subr.bf16.mxu0 %v594_v14 }
  0x10   :  { %597 = vmatpush3.bf16.msra.mxu0 %v594_v14 }
  0x11   :  { %599 = vmatprep.subr.bf16.mxu0 %v598_v17 }
  0x14   :  { %601 = vmatpush3.bf16.msra.mxu0 %v598_v17 }
  0x15   :  { %603 = vmatprep.subr.bf16.mxu0 %v602_v20 }
  0x18   :  { %605 = vmatpush3.bf16.msra.mxu0 %v602_v20 }
  0x19   :  { %607 = vmatprep.subr.bf16.mxu0 %v606_v23 }
  0x1c   :  { %609 = vmatpush3.bf16.msra.mxu0 %v606_v23 }
  0x1d   :  { %611 = vmatprep.subr.bf16.mxu0 %v610_v26 }
  0x20   :  { %613 = vmatpush3.bf16.msra.mxu0 %v610_v26 }
  0x21   :  { %615 = vmatprep.subr.bf16.mxu0 %v614_v38 }
  0x24   :  { %617 = vmatpush3.bf16.msra.mxu0 %v614_v38 }
  0xd7   :  { %v508_v27 = vpop.f32.mrb[0].mxu1 }
  0xd8   :  { %v115_v28 = vpop.f32.mrb[1].mxu1 }
  0xd9   :  { %v578_v29 = vpack.c.bf16 %v508_v27, %v115_v28 }
  0xdb   :  { %v511_v30 = vpop.f32.mrb[2].mxu1  ;;  %579 = vmatprep.subr.bf16.mxu1 %v578_v29 }
  0xdc   :  { %v125_v31 = vpop.f32.mrb[3].mxu1  ;;  %581 = vmatpush3.bf16.msra.mxu1 %v578_v29 }
  0xdd   :  { %v582_v32 = vpack.c.bf16 %v511_v30, %v125_v31 }
  0xdf   :  { %583 = vmatprep.subr.bf16.mxu1 %v582_v32 }
  0xe0   :  { %585 = vmatpush3.bf16.msra.mxu1 %v582_v32 }
  0xe3   :  { %521 = vmatmul.mubr.msk.f32.vlgmr.msra.gmra.mrb[4].mxu1 %vm141_vm2, %v24_v33 }
  0xe4   :  { %523 = vmatprep.mubr.msk.f32.mxu1 %vm141_vm2, %v25_v34 }
  0xe7   :  { %524 = vmatmul.mubr.msk.f32.gmra.mrb[6].mxu1 %vm141_vm2, %v26_v35 }
  0xe8   :  { %572 = vmatprep.mubr.msk.f32.mxu1 %vm141_vm2, %v23_v5 }
 0x1b6   :  { %v522_v40 = vpop.f32.mrb[4].mxu1 }
 0x1b7   :  { %v226_v41 = vadd.f32 %v522_v40, %v453_v39  ;;  %v220_v42 = vpop.f32.mrb[5].mxu1 }
 0x1b8   :  { %v221_v43 = vadd.f32 %v453_v39, %v220_v42 }
 0x1b9   :  { %v240_v46 = vmax.f32 %v226_v41, 0.0 }
 0x1ba   :  { %v525_v44 = vpop.f32.mrb[6].mxu1  ;;  %v239_v45 = vmax.f32 %v221_v43, 0.0 }
 0x1bb   :  { %v236_v47 = vadd.f32 %v525_v44, %v453_v39  ;;  %v230_v48 = vpop.f32.mrb[7].mxu1 }
 0x1bc   :  { %v231_v49 = vadd.f32 %v453_v39, %v230_v48  ;;  %558 = vmatprep.mubr.f32.mxu0 %v239_v45 }
 0x1bd   :  { %559 = vmatmul.mubr.f32.vlgmr.msra.gmra.mrb[0].mxu0 %v240_v46  ;;  %v242_v51 = vmax.f32 %v236_v47, 0.0 }
 0x1be   :  { %v241_v50 = vmax.f32 %v231_v49, 0.0 }
 0x1c0   :  { %561 = vmatprep.mubr.f32.mxu0 %v241_v50 }
 0x1c1   :  { %562 = vmatmul.mubr.f32.gmra.mrb[2].mxu0 %v242_v51 }
 0x290   :  { %v560_v52 = vpop.f32.mrb[0].mxu0 }
 0x291   :  { %v325_v53 = vpop.f32.mrb[1].mxu0 }
 0x292   :  { %v618_v54 = vpack.c.bf16 %v560_v52, %v325_v53 }
 0x294   :  { %v563_v55 = vpop.f32.mrb[2].mxu0  ;;  %619 = vmatprep.subr.bf16.mxu1 %v618_v54 }
 0x295   :  { %v335_v56 = vpop.f32.mrb[3].mxu0  ;;  %621 = vmatpush3.bf16.msra.mxu1 %v618_v54 }
 0x296   :  { %v622_v57 = vpack.c.bf16 %v563_v55, %v335_v56 }
 0x298   :  { %623 = vmatprep.subr.bf16.mxu1 %v622_v57 }
 0x299   :  { %625 = vmatpush3.bf16.msra.mxu1 %v622_v57 }
 0x29c   :  { %573 = vmatmul.mubr.msk.f32.vlgmr.msra.gmra.mrb[8].mxu1 %vm141_vm2, %v24_v33 }
 0x29d   :  { %575 = vmatprep.mubr.msk.f32.mxu1 %vm141_vm2, %v25_v34 }
 0x2a0   :  { %576 = vmatmul.mubr.msk.f32.gmra.mrb[10].mxu1 %vm141_vm2, %v26_v35 }
 0x36f   :  { %v574_v59 = vpop.f32.mrb[8].mxu1 }
 0x370   :  { %v423_v60 = vadd.f32 %v574_v59, %v458_v58  ;;  %v417_v61 = vpop.f32.mrb[9].mxu1 }
 0x371   :  { %v418_v62 = vadd.f32 %v458_v58, %v417_v61 }
 0x372   :  { %v437_v63 = vmax.f32 %v423_v60, 0.0 }
 0x373   :  { %v436_v0 = vmax.f32 %v418_v62, 0.0  ;;  %v577_v1 = vpop.f32.mrb[10].mxu1 }
 0x374   :  { %441 = vst [vmem:[%s768_s6 + $0x8] sm:$0xff] %v437_v63  ;;  %v433_v2 = vadd.f32 %v577_v1, %v458_v58  ;;  %v427_v3 = vpop.f32.mrb[11].mxu1 }
 0x375   :  { %440 = vst [vmem:[%s768_s6] sm:$0xff] %v436_v0  ;;  %v428_v4 = vadd.f32 %v458_v58, %v427_v3 }
 0x376   :  { %v439_v5 = vmax.f32 %v433_v2, 0.0 }
 0x377   :  { %v438_v6 = vmax.f32 %v428_v4, 0.0 }
 0x378   :  { %443 = vst [vmem:[%s768_s6 + $0x18] sm:$0xff] %v439_v5 }
 0x379   :  { %442 = vst [vmem:[%s768_s6 + $0x10] sm:$0xff] %v438_v6 }

// kernel: recurrent_formulation_net.43
= control target key start
LH: loop header
LB: loop body
LE: loop exit
PB: predicated region body
PF: predicated region fallthrough
CT: control target
= control target key end

     0   :  { %vm29_vm0 = vcmask 130048   ;;  %s639_s2 = inlined_call_operand.vmem [shape: f32[16,128], index: 2, kind: input, shape index: {}]   ;;  %s640_s1 = inlined_call_operand.vmem [shape: f32[16,16], index: 1, kind: input, shape index: {}]   ;;  %s641_s0 = inlined_call_operand.vmem [shape: f32[16,16], index: 0, kind: input, shape index: {}]   ;;  %s642_s4 = inlined_call_operand.vmem [shape: f32[128,128], index: 4, kind: input, shape index: {}]   ;;  %s643_s3 = inlined_call_operand.vmem [shape: f32[1,128], index: 3, kind: input, shape index: {}]   ;;  %s644_s5 = inlined_call_operand.vmem [shape: f32[1,128], index: 5, kind: input, shape index: {}]   ;;  %s645_s6 = inlined_call_operand.vmem [shape: f32[16,128], index: 6, kind: output, shape index: {}]  }
   0x1   :  { %v27_v0 = vld [vmem:[%s639_s2] sm:$0xff]  ;;  %v28_v1 = vld [vmem:[%s639_s2 + $0x8] sm:$0xff]  ;;  %v203_v8 = vld [vmem:[%s642_s4 + $0x10] sm:$0xff] }
   0x2   :  { %v25_v2 = vld [vmem:[%s640_s1] sm:$0xff]  ;;  %v476_v3 = vpack.c.bf16 %v28_v1, %v27_v0  ;;  %v26_v4 = vld [vmem:[%s640_s1 + $0x8] sm:$0xff]  ;;  %v204_v10 = vld [vmem:[%s642_s4 + $0x18] sm:$0xff] }
   0x3   :  { %424 = vmatprep.mubr.msk.f32.mxu1 %vm29_vm0, %v25_v2  ;;  %v23_v5 = vld [vmem:[%s641_s0] sm:$0xff]  ;;  %v202_v7 = vld [vmem:[%s642_s4 + $0x8] sm:$0xff]  ;;  %v488_v11 = vpack.c.bf16 %v204_v10, %v203_v8  ;;  %v207_v15 = vld [vmem:[%s642_s4 + $0x30] sm:$0xff] }
   0x4   :  { %477 = vmatprep.subr.bf16.mxu1 %v476_v3  ;;  %v201_v6 = vld [vmem:[%s642_s4] sm:$0xff]  ;;  %v206_v13 = vld [vmem:[%s642_s4 + $0x28] sm:$0xff]  ;;  %v208_v16 = vld [vmem:[%s642_s4 + $0x38] sm:$0xff] }
   0x5   :  { %479 = vmatpush3.bf16.msra.mxu1 %v476_v3  ;;  %v484_v9 = vpack.c.bf16 %v202_v7, %v201_v6  ;;  %v205_v12 = vld [vmem:[%s642_s4 + $0x20] sm:$0xff]  ;;  %v496_v17 = vpack.c.bf16 %v208_v16, %v207_v15  ;;  %v210_v19 = vld [vmem:[%s642_s4 + $0x48] sm:$0xff]  ;;  %v211_v21 = vld [vmem:[%s642_s4 + $0x50] sm:$0xff] }
   0x6   :  { %v492_v14 = vpack.c.bf16 %v206_v13, %v205_v12  ;;  %v209_v18 = vld [vmem:[%s642_s4 + $0x40] sm:$0xff]  ;;  %v212_v22 = vld [vmem:[%s642_s4 + $0x58] sm:$0xff]  ;;  %v214_v25 = vld [vmem:[%s642_s4 + $0x68] sm:$0xff] }
   0x7   :  { %485 = vmatprep.subr.bf16.mxu0 %v484_v9  ;;  %v500_v20 = vpack.c.bf16 %v210_v19, %v209_v18  ;;  %v504_v23 = vpack.c.bf16 %v212_v22, %v211_v21  ;;  %v213_v24 = vld [vmem:[%s642_s4 + $0x60] sm:$0xff]  ;;  %v24_v30 = vld [vmem:[%s641_s0 + $0x8] sm:$0xff]  ;;  %v215_v31 = vld [vmem:[%s642_s4 + $0x70] sm:$0xff] }
   0x8   :  { %425 = vmatmul.mubr.msk.f32.vlgmr.msra.gmra.mrb[0].mxu1 %vm29_vm0, %v26_v4  ;;  %487 = vmatpush3.bf16.msra.mxu0 %v484_v9  ;;  %v508_v26 = vpack.c.bf16 %v214_v25, %v213_v24  ;;  %v216_v32 = vld [vmem:[%s642_s4 + $0x78] sm:$0xff]  ;;  %v384_v34 = vld [vmem:[%s643_s3] ss:$0 sm:$0xff] }
   0x9   :  { %431 = vmatprep.mubr.msk.f32.mxu1 %vm29_vm0, %v23_v5  ;;  %489 = vmatprep.subr.bf16.mxu0 %v488_v11  ;;  %v512_v33 = vpack.c.bf16 %v216_v32, %v215_v31  ;;  %v387_v44 = vld [vmem:[%s644_s5] ss:$0 sm:$0xff] }
   0xc   :  { %491 = vmatpush3.bf16.msra.mxu0 %v488_v11 }
   0xd   :  { %493 = vmatprep.subr.bf16.mxu0 %v492_v14 }
  0x10   :  { %495 = vmatpush3.bf16.msra.mxu0 %v492_v14 }
  0x11   :  { %497 = vmatprep.subr.bf16.mxu0 %v496_v17 }
  0x14   :  { %499 = vmatpush3.bf16.msra.mxu0 %v496_v17 }
  0x15   :  { %501 = vmatprep.subr.bf16.mxu0 %v500_v20 }
  0x18   :  { %503 = vmatpush3.bf16.msra.mxu0 %v500_v20 }
  0x19   :  { %505 = vmatprep.subr.bf16.mxu0 %v504_v23 }
  0x1c   :  { %507 = vmatpush3.bf16.msra.mxu0 %v504_v23 }
  0x1d   :  { %509 = vmatprep.subr.bf16.mxu0 %v508_v26 }
  0x20   :  { %511 = vmatpush3.bf16.msra.mxu0 %v508_v26 }
  0x21   :  { %513 = vmatprep.subr.bf16.mxu0 %v512_v33 }
  0x24   :  { %515 = vmatpush3.bf16.msra.mxu0 %v512_v33 }
  0xdb   :  { %v426_v27 = vpop.f32.mrb[0].mxu1 }
  0xdc   :  { %v102_v28 = vpop.f32.mrb[1].mxu1 }
  0xdd   :  { %v480_v29 = vpack.c.bf16 %v426_v27, %v102_v28 }
  0xdf   :  { %481 = vmatprep.subr.bf16.mxu1 %v480_v29 }
  0xe0   :  { %483 = vmatpush3.bf16.msra.mxu1 %v480_v29 }
  0xe3   :  { %432 = vmatmul.mubr.msk.f32.vlgmr.msra.gmra.mrb[2].mxu1 %vm29_vm0, %v24_v30 }
  0xe4   :  { %473 = vmatprep.mubr.msk.f32.mxu1 %vm29_vm0, %v23_v5 }
 0x1b6   :  { %v433_v35 = vpop.f32.mrb[2].mxu1 }
 0x1b7   :  { %v196_v36 = vadd.f32 %v433_v35, %v384_v34  ;;  %v190_v37 = vpop.f32.mrb[3].mxu1 }
 0x1b8   :  { %v191_v38 = vadd.f32 %v384_v34, %v190_v37 }
 0x1b9   :  { %v200_v40 = vmax.f32 %v196_v36, 0.0 }
 0x1ba   :  { %v199_v39 = vmax.f32 %v191_v38, 0.0 }
 0x1bc   :  { %466 = vmatprep.mubr.f32.mxu0 %v199_v39 }
 0x1bd   :  { %467 = vmatmul.mubr.f32.vlgmr.msra.gmra.mrb[0].mxu0 %v200_v40 }
 0x290   :  { %v468_v41 = vpop.f32.mrb[0].mxu0 }
 0x291   :  { %v283_v42 = vpop.f32.mrb[1].mxu0 }
 0x292   :  { %v516_v43 = vpack.c.bf16 %v468_v41, %v283_v42 }
 0x294   :  { %517 = vmatprep.subr.bf16.mxu1 %v516_v43 }
 0x295   :  { %519 = vmatpush3.bf16.msra.mxu1 %v516_v43 }
 0x298   :  { %474 = vmatmul.mubr.msk.f32.vlgmr.msra.gmra.mrb[4].mxu1 %vm29_vm0, %v24_v30 }
 0x36b   :  { %v475_v45 = vpop.f32.mrb[4].mxu1 }
 0x36c   :  { %v371_v46 = vadd.f32 %v475_v45, %v387_v44  ;;  %v365_v47 = vpop.f32.mrb[5].mxu1 }
 0x36d   :  { %v366_v48 = vadd.f32 %v387_v44, %v365_v47 }
 0x36e   :  { %v375_v49 = vmax.f32 %v371_v46, 0.0 }
 0x36f   :  { %v374_v50 = vmax.f32 %v366_v48, 0.0 }
 0x370   :  { %377 = vst [vmem:[%s645_s6 + $0x8] sm:$0xff] %v375_v49 }
 0x371   :  { %376 = vst [vmem:[%s645_s6] sm:$0xff] %v374_v50 }

// kernel: recurrent_formulation_net.44
= control target key start
LH: loop header
LB: loop body
LE: loop exit
PB: predicated region body
PF: predicated region fallthrough
CT: control target
= control target key end

     0   :  { %v10_v0 = vlaneseq  ;;  %vm19_vm0 = vcmask 130048   ;;  %s152_s0 = inlined_call_operand.vmem [shape: f32[16,16], index: 0, kind: input, shape index: {}]   ;;  %s153_s1 = inlined_call_operand.vmem [shape: f32[16,16], index: 1, kind: output, shape index: {}]  }
   0x1   :  { %v8_v1 = vld [vmem:[%s152_s0] sm:$0xff]  ;;  %v9_v4 = vld [vmem:[%s152_s0 + $0x8] sm:$0xff] }
   0x2   :  { %v11_v2 = vshrl.u32 %v10_v0, 7  ;;  %v14_v3 = vand.u32 127, %v10_v0 }
   0x4   :  { %v12_v5 = vadd.s32 8, %v11_v2  ;;  %vm15_vm1 = vcmp.eq.s32.totalorder %v11_v2, %v14_v3 }
   0x5   :  { %v17_v6 = vsel %vm15_vm1, 1.0, %v8_v1 }
   0x6   :  { %vm16_vm2 = vcmp.eq.s32.totalorder %v12_v5, %v14_v3  ;;  %119 = vmatprep.mubr.msk.f32.mxu0 %vm19_vm0, %v17_v6 }
   0x7   :  { %v18_v7 = vsel %vm16_vm2, 1.0, %v9_v4 }
   0x8   :  { %v122_v8 = vpack.c.bf16 %v18_v7, %v17_v6 }
   0xa   :  { %123 = vmatprep.subr.bf16.mxu0 %v122_v8 }
   0xb   :  { %125 = vmatpush3.bf16.msra.mxu0 %v122_v8 }
   0xe   :  { %120 = vmatmul.mubr.msk.f32.vlgmr.msra.gmra.mrb[0].mxu0 %vm19_vm0, %v18_v7 }
  0xe1   :  { %v121_v9 = vpop.f32.mrb[0].mxu0 }
  0xe2   :  { %v102_v10 = vsel %vm16_vm2, 0.0, %v121_v9  ;;  %v92_v11 = vpop.f32.mrb[1].mxu0 }
  0xe3   :  { %104 = vst.msk [vmem:[%s153_s1 + $0x8] sm:$0xff] %vm19_vm0, %v102_v10  ;;  %v101_v12 = vsel %vm15_vm1, 0.0, %v92_v11 }
  0xe4   :  { %103 = vst.msk [vmem:[%s153_s1] sm:$0xff] %vm19_vm0, %v101_v12 }

// kernel: recurrent_formulation_net.46
= control target key start
LH: loop header
LB: loop body
LE: loop exit
PB: predicated region body
PF: predicated region fallthrough
CT: control target
= control target key end

     0   :  { %v9_v0 = vlaneseq  ;;  %v105_v1 = vmov 0.0   ;;  %vm106_vm0 = vmmov 0   ;;  %vm15_vm2 = vcmask 64512   ;;  %s123_s0 = inlined_call_operand.vmem [shape: f32[8,8], index: 0, kind: input, shape index: {}]   ;;  %s124_s1 = inlined_call_operand.vmem [shape: f32[8,8], index: 1, kind: output, shape index: {}]  }
   0x1   :  { %98 = vmatprep.subr.mxu0 %v105_v1  ;;  %100 = vmatprep.mubr.msk.f32.mxu0 %vm106_vm0, %v105_v1  ;;  %v8_v2 = vld [vmem:[%s123_s0] sm:$0xff] }
   0x2   :  { %v10_v3 = vshrl.u32 %v9_v0, 7  ;;  %v12_v4 = vand.u32 127, %v9_v0 }
   0x4   :  { %vm13_vm1 = vcmp.eq.s32.totalorder %v10_v3, %v12_v4 }
   0x5   :  { %v14_v5 = vsel %vm13_vm1, 1.0, %v8_v2 }
   0x6   :  { %99 = vmatpush3.msra.mxu0 %v14_v5 }
   0x7   :  { %101 = vmatmul.mubr.msk.f32.vlgmr.msra.gmra.mrb[0].mxu0 %vm15_vm2, %v14_v5 }
  0xda   :  { %v85_v6 = vpop.f32.mrb[0].mxu0 }
  0xdb   :  { %v89_v7 = vsel %vm13_vm1, 0.0, %v85_v6  ;;  %v102_v8 = vpop.f32.mrb[1].mxu0 }
  0xdc   :  { %90 = vst.msk [vmem:[%s124_s1] sm:$0xff] %vm15_vm2, %v89_v7 }

// kernel: recurrent_formulation_net.45
= control target key start
LH: loop header
LB: loop body
LE: loop exit
PB: predicated region body
PF: predicated region fallthrough
CT: control target
= control target key end

     0   :  { %v463_v0 = vmov 0.0|0.0   ;;  %vm464_vm0 = vmmov 0   ;;  %v465_v3 = vmov 0.0   ;;  %vm27_vm1 = vcmask 130048   ;;  %s576_s2 = inlined_call_operand.vmem [shape: f32[16,128], index: 2, kind: input, shape index: {}]   ;;  %s577_s1 = inlined_call_operand.vmem [shape: f32[8,16], index: 1, kind: input, shape index: {}]   ;;  %s578_s4 = inlined_call_operand.vmem [shape: f32[128,128], index: 4, kind: input, shape index: {}]   ;;  %s579_s0 = inlined_call_operand.vmem [shape: f32[8,8], index: 0, kind: input, shape index: {}]   ;;  %s580_s3 = inlined_call_operand.vmem [shape: f32[1,128], index: 3, kind: input, shape index: {}]   ;;  %s581_s5 = inlined_call_operand.vmem [shape: f32[1,128], index: 5, kind: input, shape index: {}]   ;;  %s582_s6 = inlined_call_operand.vmem [shape: f32[8,128], index: 6, kind: output, shape index: {}]  }
   0x1   :  { %433 = vmatprep.subr.bf16.mxu0 %v463_v0  ;;  %v25_v1 = vld [vmem:[%s576_s2] sm:$0xff]  ;;  %v26_v2 = vld [vmem:[%s576_s2 + $0x8] sm:$0xff]  ;;  %385 = vmatprep.mubr.msk.f32.mxu0 %vm464_vm0, %v465_v3  ;;  %v185_v8 = vld [vmem:[%s578_s4 + $0x10] sm:$0xff]  ;;  %vm108_vm2 = vcmask 64512  }
   0x2   :  { %v434_v4 = vpack.c.bf16 %v26_v2, %v25_v1  ;;  %436 = vmatprep.subr.bf16.mxu1 %v463_v0  ;;  %425 = vmatprep.mubr.msk.f32.mxu1 %vm464_vm0, %v465_v3  ;;  %v24_v5 = vld [vmem:[%s577_s1] sm:$0xff]  ;;  %v184_v7 = vld [vmem:[%s578_s4 + $0x8] sm:$0xff]  ;;  %v186_v10 = vld [vmem:[%s578_s4 + $0x18] sm:$0xff] }
   0x3   :  { %v183_v6 = vld [vmem:[%s578_s4] sm:$0xff]  ;;  %v440_v11 = vpack.c.bf16 %v186_v10, %v185_v8  ;;  %v188_v13 = vld [vmem:[%s578_s4 + $0x28] sm:$0xff]  ;;  %v189_v15 = vld [vmem:[%s578_s4 + $0x30] sm:$0xff] }
   0x4   :  { %435 = vmatpush3.bf16.msra.mxu0 %v434_v4  ;;  %v437_v9 = vpack.c.bf16 %v184_v7, %v183_v6  ;;  %v187_v12 = vld [vmem:[%s578_s4 + $0x20] sm:$0xff]  ;;  %v190_v16 = vld [vmem:[%s578_s4 + $0x38] sm:$0xff]  ;;  %v192_v19 = vld [vmem:[%s578_s4 + $0x48] sm:$0xff] }
   0x5   :  { %388 = vmatprep.subr.mxu0 %v465_v3  ;;  %v443_v14 = vpack.c.bf16 %v188_v13, %v187_v12  ;;  %v446_v17 = vpack.c.bf16 %v190_v16, %v189_v15  ;;  %v191_v18 = vld [vmem:[%s578_s4 + $0x40] sm:$0xff]  ;;  %v193_v21 = vld [vmem:[%s578_s4 + $0x50] sm:$0xff]  ;;  %v194_v22 = vld [vmem:[%s578_s4 + $0x58] sm:$0xff] }
   0x6   :  { %438 = vmatpush3.bf16.msra.mxu1 %v437_v9  ;;  %v449_v20 = vpack.c.bf16 %v192_v19, %v191_v18  ;;  %v452_v23 = vpack.c.bf16 %v194_v22, %v193_v21  ;;  %v195_v24 = vld [vmem:[%s578_s4 + $0x60] sm:$0xff]  ;;  %v196_v25 = vld [vmem:[%s578_s4 + $0x68] sm:$0xff]  ;;  %v197_v30 = vld [vmem:[%s578_s4 + $0x70] sm:$0xff] }
   0x7   :  { %386 = vmatmul.mubr.msk.f32.vlgmr.msra.gmra.mrb[0].mxu0 %vm27_vm1, %v24_v5  ;;  %439 = vmatprep.subr.bf16.mxu1 %v463_v0  ;;  %v455_v26 = vpack.c.bf16 %v196_v25, %v195_v24  ;;  %v23_v27 = vld [vmem:[%s579_s0] sm:$0xff]  ;;  %v198_v31 = vld [vmem:[%s578_s4 + $0x78] sm:$0xff] }
   0x8   :  { %390 = vmatprep.mubr.msk.f32.mxu0 %vm464_vm0, %v465_v3  ;;  %v458_v32 = vpack.c.bf16 %v198_v31, %v197_v30  ;;  %v353_v33 = vld [vmem:[%s580_s3] ss:$0 sm:$0xff] }
   0x9   :  { %v355_v40 = vld [vmem:[%s581_s5] ss:$0 sm:$0xff] }
   0xa   :  { %441 = vmatpush3.bf16.msra.mxu1 %v440_v11 }
   0xb   :  { %442 = vmatprep.subr.bf16.mxu1 %v463_v0 }
   0xe   :  { %444 = vmatpush3.bf16.msra.mxu1 %v443_v14 }
   0xf   :  { %445 = vmatprep.subr.bf16.mxu1 %v463_v0 }
  0x12   :  { %447 = vmatpush3.bf16.msra.mxu1 %v446_v17 }
  0x13   :  { %448 = vmatprep.subr.bf16.mxu1 %v463_v0 }
  0x16   :  { %450 = vmatpush3.bf16.msra.mxu1 %v449_v20 }
  0x17   :  { %451 = vmatprep.subr.bf16.mxu1 %v463_v0 }
  0x1a   :  { %453 = vmatpush3.bf16.msra.mxu1 %v452_v23 }
  0x1b   :  { %454 = vmatprep.subr.bf16.mxu1 %v463_v0 }
  0x1e   :  { %456 = vmatpush3.bf16.msra.mxu1 %v455_v26 }
  0x1f   :  { %457 = vmatprep.subr.bf16.mxu1 %v463_v0 }
  0x22   :  { %459 = vmatpush3.bf16.msra.mxu1 %v458_v32 }
  0xda   :  { %v97_v28 = vpop.f32.mrb[0].mxu0 }
  0xdb   :  { %v387_v29 = vpop.f32.mrb[1].mxu0  ;;  %389 = vmatpush3.msra.mxu0 %v97_v28 }
  0xdc   :  { %391 = vmatmul.mubr.msk.f32.vlgmr.msra.gmra.mrb[2].mxu0 %vm108_vm2, %v23_v27  ;;  %428 = vmatprep.subr.mxu0 %v465_v3 }
  0xdd   :  { %430 = vmatprep.mubr.msk.f32.mxu0 %vm464_vm0, %v465_v3 }
 0x1af   :  { %v178_v34 = vpop.f32.mrb[2].mxu0 }
 0x1b0   :  { %v179_v35 = vadd.f32 %v353_v33, %v178_v34  ;;  %v392_v36 = vpop.f32.mrb[3].mxu0 }
 0x1b2   :  { %v182_v37 = vmax.f32 %v179_v35, 0.0 }
 0x1b4   :  { %426 = vmatmul.mubr.f32.vlgmr.msra.gmra.mrb[0].mxu1 %v182_v37 }
 0x287   :  { %v265_v38 = vpop.f32.mrb[0].mxu1 }
 0x288   :  { %v427_v39 = vpop.f32.mrb[1].mxu1  ;;  %429 = vmatpush3.msra.mxu0 %v265_v38 }
 0x289   :  { %431 = vmatmul.mubr.msk.f32.vlgmr.msra.gmra.mrb[4].mxu0 %vm108_vm2, %v23_v27 }
 0x35c   :  { %v342_v41 = vpop.f32.mrb[4].mxu0 }
 0x35d   :  { %v343_v42 = vadd.f32 %v355_v40, %v342_v41  ;;  %v432_v43 = vpop.f32.mrb[5].mxu0 }
 0x35f   :  { %v346_v44 = vmax.f32 %v343_v42, 0.0 }
 0x361   :  { %347 = vst [vmem:[%s582_s6] sm:$0xff] %v346_v44 }

// kernel: recurrent_formulation_net.50
= control target key start
LH: loop header
LB: loop body
LE: loop exit
PB: predicated region body
PF: predicated region fallthrough
CT: control target
= control target key end

     0   :  { %v474_v0 = vmov 0.0|0.0   ;;  %vm475_vm0 = vmmov 0   ;;  %v476_v4 = vmov 0.0   ;;  %vm29_vm1 = vcmask 261120   ;;  %s593_s2 = inlined_call_operand.vmem [shape: f32[32,128], index: 2, kind: input, shape index: {}]   ;;  %s594_s1 = inlined_call_operand.vmem [shape: f32[8,32], index: 1, kind: input, shape index: {}]   ;;  %s595_s4 = inlined_call_operand.vmem [shape: f32[128,128], index: 4, kind: input, shape index: {}]   ;;  %s596_s0 = inlined_call_operand.vmem [shape: f32[8,8], index: 0, kind: input, shape index: {}]   ;;  %s597_s3 = inlined_call_operand.vmem [shape: f32[1,128], index: 3, kind: input, shape index: {}]   ;;  %s598_s5 = inlined_call_operand.vmem [shape: f32[1,128], index: 5, kind: input, shape index: {}]   ;;  %s599_s6 = inlined_call_operand.vmem [shape: f32[8,128], index: 6, kind: output, shape index: {}]  }
   0x1   :  { %441 = vmatprep.subr.bf16.mxu0 %v474_v0  ;;  %v25_v1 = vld [vmem:[%s593_s2] sm:$0xff]  ;;  %v26_v2 = vld [vmem:[%s593_s2 + $0x8] sm:$0xff]  ;;  %v27_v3 = vld [vmem:[%s593_s2 + $0x10] sm:$0xff]  ;;  %393 = vmatprep.mubr.msk.f32.mxu0 %vm475_vm0, %v476_v4  ;;  %vm110_vm2 = vcmask 64512  }
   0x2   :  { %v442_v5 = vpack.c.bf16 %v26_v2, %v25_v1  ;;  %v28_v6 = vld [vmem:[%s593_s2 + $0x18] sm:$0xff]  ;;  %447 = vmatprep.subr.bf16.mxu1 %v474_v0  ;;  %433 = vmatprep.mubr.msk.f32.mxu1 %vm475_vm0, %v476_v4  ;;  %v24_v8 = vld [vmem:[%s594_s1] sm:$0xff]  ;;  %v186_v10 = vld [vmem:[%s595_s4 + $0x8] sm:$0xff] }
   0x3   :  { %v445_v7 = vpack.c.bf16 %v28_v6, %v27_v3  ;;  %v185_v9 = vld [vmem:[%s595_s4] sm:$0xff]  ;;  %v187_v11 = vld [vmem:[%s595_s4 + $0x10] sm:$0xff]  ;;  %v188_v13 = vld [vmem:[%s595_s4 + $0x18] sm:$0xff] }
   0x4   :  { %443 = vmatpush3.bf16.msra.mxu0 %v442_v5  ;;  %v448_v12 = vpack.c.bf16 %v186_v10, %v185_v9  ;;  %v451_v14 = vpack.c.bf16 %v188_v13, %v187_v11  ;;  %v189_v15 = vld [vmem:[%s595_s4 + $0x20] sm:$0xff]  ;;  %v190_v16 = vld [vmem:[%s595_s4 + $0x28] sm:$0xff]  ;;  %v191_v18 = vld [vmem:[%s595_s4 + $0x30] sm:$0xff] }
   0x5   :  { %444 = vmatprep.subr.bf16.mxu0 %v474_v0  ;;  %v454_v17 = vpack.c.bf16 %v190_v16, %v189_v15  ;;  %v192_v19 = vld [vmem:[%s595_s4 + $0x38] sm:$0xff]  ;;  %v193_v21 = vld [vmem:[%s595_s4 + $0x40] sm:$0xff]  ;;  %v194_v22 = vld [vmem:[%s595_s4 + $0x48] sm:$0xff] }
   0x6   :  { %449 = vmatpush3.bf16.msra.mxu1 %v448_v12  ;;  %v457_v20 = vpack.c.bf16 %v192_v19, %v191_v18  ;;  %v460_v23 = vpack.c.bf16 %v194_v22, %v193_v21  ;;  %v195_v24 = vld [vmem:[%s595_s4 + $0x50] sm:$0xff]  ;;  %v196_v25 = vld [vmem:[%s595_s4 + $0x58] sm:$0xff]  ;;  %v197_v27 = vld [vmem:[%s595_s4 + $0x60] sm:$0xff] }
   0x7   :  { %450 = vmatprep.subr.bf16.mxu1 %v474_v0  ;;  %v463_v26 = vpack.c.bf16 %v196_v25, %v195_v24  ;;  %v198_v28 = vld [vmem:[%s595_s4 + $0x68] sm:$0xff]  ;;  %v23_v30 = vld [vmem:[%s596_s0] sm:$0xff]  ;;  %v199_v33 = vld [vmem:[%s595_s4 + $0x70] sm:$0xff] }
   0x8   :  { %446 = vmatpush3.bf16.msra.mxu0 %v445_v7  ;;  %v466_v29 = vpack.c.bf16 %v198_v28, %v197_v27  ;;  %v200_v34 = vld [vmem:[%s595_s4 + $0x78] sm:$0xff]  ;;  %v355_v36 = vld [vmem:[%s597_s3] ss:$0 sm:$0xff] }
   0x9   :  { %396 = vmatprep.subr.mxu0 %v476_v4  ;;  %v469_v35 = vpack.c.bf16 %v200_v34, %v199_v33  ;;  %v357_v43 = vld [vmem:[%s598_s5] ss:$0 sm:$0xff] }
   0xa   :  { %452 = vmatpush3.bf16.msra.mxu1 %v451_v14 }
   0xb   :  { %394 = vmatmul.mubr.msk.f32.vlgmr.msra.gmra.mrb[0].mxu0 %vm29_vm1, %v24_v8  ;;  %453 = vmatprep.subr.bf16.mxu1 %v474_v0 }
   0xc   :  { %398 = vmatprep.mubr.msk.f32.mxu0 %vm475_vm0, %v476_v4 }
   0xe   :  { %455 = vmatpush3.bf16.msra.mxu1 %v454_v17 }
   0xf   :  { %456 = vmatprep.subr.bf16.mxu1 %v474_v0 }
  0x12   :  { %458 = vmatpush3.bf16.msra.mxu1 %v457_v20 }
  0x13   :  { %459 = vmatprep.subr.bf16.mxu1 %v474_v0 }
  0x16   :  { %461 = vmatpush3.bf16.msra.mxu1 %v460_v23 }
  0x17   :  { %462 = vmatprep.subr.bf16.mxu1 %v474_v0 }
  0x1a   :  { %464 = vmatpush3.bf16.msra.mxu1 %v463_v26 }
  0x1b   :  { %465 = vmatprep.subr.bf16.mxu1 %v474_v0 }
  0x1e   :  { %467 = vmatpush3.bf16.msra.mxu1 %v466_v29 }
  0x1f   :  { %468 = vmatprep.subr.bf16.mxu1 %v474_v0 }
  0x22   :  { %470 = vmatpush3.bf16.msra.mxu1 %v469_v35 }
  0xde   :  { %v99_v31 = vpop.f32.mrb[0].mxu0 }
  0xdf   :  { %v395_v32 = vpop.f32.mrb[1].mxu0  ;;  %397 = vmatpush3.msra.mxu0 %v99_v31 }
  0xe0   :  { %399 = vmatmul.mubr.msk.f32.vlgmr.msra.gmra.mrb[2].mxu0 %vm110_vm2, %v23_v30  ;;  %436 = vmatprep.subr.mxu0 %v476_v4 }
  0xe1   :  { %438 = vmatprep.mubr.msk.f32.mxu0 %vm475_vm0, %v476_v4 }
 0x1b3   :  { %v180_v37 = vpop.f32.mrb[2].mxu0 }
 0x1b4   :  { %v181_v38 = vadd.f32 %v355_v36, %v180_v37  ;;  %v400_v39 = vpop.f32.mrb[3].mxu0 }
 0x1b6   :  { %v184_v40 = vmax.f32 %v181_v38, 0.0 }
 0x1b8   :  { %434 = vmatmul.mubr.f32.vlgmr.msra.gmra.mrb[0].mxu1 %v184_v40 }
 0x28b   :  { %v267_v41 = vpop.f32.mrb[0].mxu1 }
 0x28c   :  { %v435_v42 = vpop.f32.mrb[1].mxu1  ;;  %437 = vmatpush3.msra.mxu0 %v267_v41 }
 0x28d   :  { %439 = vmatmul.mubr.msk.f32.vlgmr.msra.gmra.mrb[4].mxu0 %vm110_vm2, %v23_v30 }
 0x360   :  { %v344_v44 = vpop.f32.mrb[4].mxu0 }
 0x361   :  { %v345_v45 = vadd.f32 %v357_v43, %v344_v44  ;;  %v440_v46 = vpop.f32.mrb[5].mxu0 }
 0x363   :  { %v348_v47 = vmax.f32 %v345_v45, 0.0 }
 0x365   :  { %349 = vst [vmem:[%s599_s6] sm:$0xff] %v348_v47 }

// kernel: recurrent_formulation_net.52
= control target key start
LH: loop header
LB: loop body
LE: loop exit
PB: predicated region body
PF: predicated region fallthrough
CT: control target
= control target key end

     0   :  { %vm31_vm0 = vcmask 261120   ;;  %vm120_vm1 = vcmask 130048   ;;  %s656_s2 = inlined_call_operand.vmem [shape: f32[32,128], index: 2, kind: input, shape index: {}]   ;;  %s657_s1 = inlined_call_operand.vmem [shape: f32[16,32], index: 1, kind: input, shape index: {}]   ;;  %s658_s0 = inlined_call_operand.vmem [shape: f32[16,16], index: 0, kind: input, shape index: {}]   ;;  %s659_s4 = inlined_call_operand.vmem [shape: f32[128,128], index: 4, kind: input, shape index: {}]   ;;  %s660_s3 = inlined_call_operand.vmem [shape: f32[1,128], index: 3, kind: input, shape index: {}]   ;;  %s661_s5 = inlined_call_operand.vmem [shape: f32[1,128], index: 5, kind: input, shape index: {}]   ;;  %s662_s6 = inlined_call_operand.vmem [shape: f32[16,128], index: 6, kind: output, shape index: {}]  }
   0x1   :  { %v27_v0 = vld [vmem:[%s656_s2] sm:$0xff]  ;;  %v28_v1 = vld [vmem:[%s656_s2 + $0x8] sm:$0xff]  ;;  %v29_v2 = vld [vmem:[%s656_s2 + $0x10] sm:$0xff] }
   0x2   :  { %v485_v3 = vpack.c.bf16 %v28_v1, %v27_v0  ;;  %v30_v4 = vld [vmem:[%s656_s2 + $0x18] sm:$0xff]  ;;  %v25_v5 = vld [vmem:[%s657_s1] sm:$0xff]  ;;  %v26_v7 = vld [vmem:[%s657_s1 + $0x8] sm:$0xff] }
   0x3   :  { %v489_v6 = vpack.c.bf16 %v30_v4, %v29_v2  ;;  %433 = vmatprep.mubr.msk.f32.mxu0 %vm31_vm0, %v25_v5  ;;  %v23_v8 = vld [vmem:[%s658_s0] sm:$0xff]  ;;  %v205_v10 = vld [vmem:[%s659_s4 + $0x8] sm:$0xff]  ;;  %v206_v11 = vld [vmem:[%s659_s4 + $0x10] sm:$0xff] }
   0x4   :  { %486 = vmatprep.subr.bf16.mxu0 %v485_v3  ;;  %v204_v9 = vld [vmem:[%s659_s4] sm:$0xff]  ;;  %v207_v13 = vld [vmem:[%s659_s4 + $0x18] sm:$0xff]  ;;  %v209_v16 = vld [vmem:[%s659_s4 + $0x28] sm:$0xff] }
   0x5   :  { %488 = vmatpush3.bf16.msra.mxu0 %v485_v3  ;;  %v497_v12 = vpack.c.bf16 %v205_v10, %v204_v9  ;;  %v501_v14 = vpack.c.bf16 %v207_v13, %v206_v11  ;;  %v208_v15 = vld [vmem:[%s659_s4 + $0x20] sm:$0xff]  ;;  %v210_v18 = vld [vmem:[%s659_s4 + $0x30] sm:$0xff]  ;;  %v211_v19 = vld [vmem:[%s659_s4 + $0x38] sm:$0xff] }
   0x6   :  { %490 = vmatprep.subr.bf16.mxu0 %v489_v6  ;;  %v505_v17 = vpack.c.bf16 %v209_v16, %v208_v15  ;;  %v509_v20 = vpack.c.bf16 %v211_v19, %v210_v18  ;;  %v212_v21 = vld [vmem:[%s659_s4 + $0x40] sm:$0xff]  ;;  %v213_v22 = vld [vmem:[%s659_s4 + $0x48] sm:$0xff]  ;;  %v214_v24 = vld [vmem:[%s659_s4 + $0x50] sm:$0xff] }
   0x7   :  { %498 = vmatprep.subr.bf16.mxu1 %v497_v12  ;;  %v513_v23 = vpack.c.bf16 %v213_v22, %v212_v21  ;;  %v215_v25 = vld [vmem:[%s659_s4 + $0x58] sm:$0xff]  ;;  %v216_v27 = vld [vmem:[%s659_s4 + $0x60] sm:$0xff]  ;;  %v217_v28 = vld [vmem:[%s659_s4 + $0x68] sm:$0xff] }
   0x8   :  { %500 = vmatpush3.bf16.msra.mxu1 %v497_v12  ;;  %v517_v26 = vpack.c.bf16 %v215_v25, %v214_v24  ;;  %v521_v29 = vpack.c.bf16 %v217_v28, %v216_v27  ;;  %v24_v33 = vld [vmem:[%s658_s0 + $0x8] sm:$0xff]  ;;  %v218_v34 = vld [vmem:[%s659_s4 + $0x70] sm:$0xff]  ;;  %v219_v35 = vld [vmem:[%s659_s4 + $0x78] sm:$0xff] }
   0x9   :  { %492 = vmatpush3.bf16.msra.mxu0 %v489_v6  ;;  %502 = vmatprep.subr.bf16.mxu1 %v501_v14  ;;  %v525_v36 = vpack.c.bf16 %v219_v35, %v218_v34  ;;  %v387_v37 = vld [vmem:[%s660_s3] ss:$0 sm:$0xff] }
   0xa   :  { %v390_v47 = vld [vmem:[%s661_s5] ss:$0 sm:$0xff] }
   0xc   :  { %434 = vmatmul.mubr.msk.f32.vlgmr.msra.gmra.mrb[0].mxu0 %vm31_vm0, %v26_v7  ;;  %504 = vmatpush3.bf16.msra.mxu1 %v501_v14 }
   0xd   :  { %440 = vmatprep.mubr.msk.f32.mxu0 %vm120_vm1, %v23_v8  ;;  %506 = vmatprep.subr.bf16.mxu1 %v505_v17 }
  0x10   :  { %508 = vmatpush3.bf16.msra.mxu1 %v505_v17 }
  0x11   :  { %510 = vmatprep.subr.bf16.mxu1 %v509_v20 }
  0x14   :  { %512 = vmatpush3.bf16.msra.mxu1 %v509_v20 }
  0x15   :  { %514 = vmatprep.subr.bf16.mxu1 %v513_v23 }
  0x18   :  { %516 = vmatpush3.bf16.msra.mxu1 %v513_v23 }
  0x19   :  { %518 = vmatprep.subr.bf16.mxu1 %v517_v26 }
  0x1c   :  { %520 = vmatpush3.bf16.msra.mxu1 %v517_v26 }
  0x1d   :  { %522 = vmatprep.subr.bf16.mxu1 %v521_v29 }
  0x20   :  { %524 = vmatpush3.bf16.msra.mxu1 %v521_v29 }
  0x21   :  { %526 = vmatprep.subr.bf16.mxu1 %v525_v36 }
  0x24   :  { %528 = vmatpush3.bf16.msra.mxu1 %v525_v36 }
  0xdf   :  { %v435_v30 = vpop.f32.mrb[0].mxu0 }
  0xe0   :  { %v104_v31 = vpop.f32.mrb[1].mxu0 }
  0xe1   :  { %v493_v32 = vpack.c.bf16 %v435_v30, %v104_v31 }
  0xe3   :  { %494 = vmatprep.subr.bf16.mxu0 %v493_v32 }
  0xe4   :  { %496 = vmatpush3.bf16.msra.mxu0 %v493_v32 }
  0xe7   :  { %441 = vmatmul.mubr.msk.f32.vlgmr.msra.gmra.mrb[2].mxu0 %vm120_vm1, %v24_v33 }
  0xe8   :  { %482 = vmatprep.mubr.msk.f32.mxu0 %vm120_vm1, %v23_v8 }
 0x1ba   :  { %v442_v38 = vpop.f32.mrb[2].mxu0 }
 0x1bb   :  { %v199_v39 = vadd.f32 %v442_v38, %v387_v37  ;;  %v193_v40 = vpop.f32.mrb[3].mxu0 }
 0x1bc   :  { %v194_v41 = vadd.f32 %v387_v37, %v193_v40 }
 0x1bd   :  { %v203_v43 = vmax.f32 %v199_v39, 0.0 }
 0x1be   :  { %v202_v42 = vmax.f32 %v194_v41, 0.0 }
 0x1c0   :  { %475 = vmatprep.mubr.f32.mxu1 %v202_v42 }
 0x1c1   :  { %476 = vmatmul.mubr.f32.vlgmr.msra.gmra.mrb[0].mxu1 %v203_v43 }
 0x294   :  { %v477_v44 = vpop.f32.mrb[0].mxu1 }
 0x295   :  { %v286_v45 = vpop.f32.mrb[1].mxu1 }
 0x296   :  { %v529_v46 = vpack.c.bf16 %v477_v44, %v286_v45 }
 0x298   :  { %530 = vmatprep.subr.bf16.mxu0 %v529_v46 }
 0x299   :  { %532 = vmatpush3.bf16.msra.mxu0 %v529_v46 }
 0x29c   :  { %483 = vmatmul.mubr.msk.f32.vlgmr.msra.gmra.mrb[4].mxu0 %vm120_vm1, %v24_v33 }
 0x36f   :  { %v484_v48 = vpop.f32.mrb[4].mxu0 }
 0x370   :  { %v374_v49 = vadd.f32 %v484_v48, %v390_v47  ;;  %v368_v50 = vpop.f32.mrb[5].mxu0 }
 0x371   :  { %v369_v51 = vadd.f32 %v390_v47, %v368_v50 }
 0x372   :  { %v378_v52 = vmax.f32 %v374_v49, 0.0 }
 0x373   :  { %v377_v53 = vmax.f32 %v369_v51, 0.0 }
 0x374   :  { %380 = vst [vmem:[%s662_s6 + $0x8] sm:$0xff] %v378_v52 }
 0x375   :  { %379 = vst [vmem:[%s662_s6] sm:$0xff] %v377_v53 }

// kernel: recurrent_formulation_net.53
= control target key start
LH: loop header
LB: loop body
LE: loop exit
PB: predicated region body
PF: predicated region fallthrough
CT: control target
= control target key end

     0   :  { %vm35_vm0 = vcmask 261120   ;;  %s797_s2 = inlined_call_operand.vmem [shape: f32[32,128], index: 2, kind: input, shape index: {}]   ;;  %s798_s1 = inlined_call_operand.vmem [shape: f32[32,32], index: 1, kind: input, shape index: {}]   ;;  %s799_s0 = inlined_call_operand.vmem [shape: f32[32,32], index: 0, kind: input, shape index: {}]   ;;  %s800_s4 = inlined_call_operand.vmem [shape: f32[128,128], index: 4, kind: input, shape index: {}]   ;;  %s801_s3 = inlined_call_operand.vmem [shape: f32[1,128], index: 3, kind: input, shape index: {}]   ;;  %s802_s5 = inlined_call_operand.vmem [shape: f32[1,128], index: 5, kind: input, shape index: {}]   ;;  %s803_s6 = inlined_call_operand.vmem [shape: f32[32,128], index: 6, kind: output, shape index: {}]  }
   0x1   :  { %v31_v0 = vld [vmem:[%s797_s2] sm:$0xff]  ;;  %v32_v1 = vld [vmem:[%s797_s2 + $0x8] sm:$0xff]  ;;  %v33_v2 = vld [vmem:[%s797_s2 + $0x10] sm:$0xff] }
   0x2   :  { %v584_v3 = vpack.c.bf16 %v32_v1, %v31_v0  ;;  %v34_v4 = vld [vmem:[%s797_s2 + $0x18] sm:$0xff]  ;;  %v27_v5 = vld [vmem:[%s798_s1] sm:$0xff]  ;;  %v28_v7 = vld [vmem:[%s798_s1 + $0x8] sm:$0xff] }
   0x3   :  { %v588_v6 = vpack.c.bf16 %v34_v4, %v33_v2  ;;  %512 = vmatprep.mubr.msk.f32.mxu1 %vm35_vm0, %v27_v5  ;;  %v29_v8 = vld [vmem:[%s798_s1 + $0x10] sm:$0xff]  ;;  %v30_v9 = vld [vmem:[%s798_s1 + $0x18] sm:$0xff]  ;;  %v23_v10 = vld [vmem:[%s799_s0] sm:$0xff] }
   0x4   :  { %585 = vmatprep.subr.bf16.mxu1 %v584_v3  ;;  %v241_v11 = vld [vmem:[%s800_s4] sm:$0xff]  ;;  %v242_v12 = vld [vmem:[%s800_s4 + $0x8] sm:$0xff]  ;;  %v243_v13 = vld [vmem:[%s800_s4 + $0x10] sm:$0xff] }
   0x5   :  { %587 = vmatpush3.bf16.msra.mxu1 %v584_v3  ;;  %v600_v14 = vpack.c.bf16 %v242_v12, %v241_v11  ;;  %v244_v15 = vld [vmem:[%s800_s4 + $0x18] sm:$0xff]  ;;  %v245_v17 = vld [vmem:[%s800_s4 + $0x20] sm:$0xff]  ;;  %v246_v18 = vld [vmem:[%s800_s4 + $0x28] sm:$0xff] }
   0x6   :  { %589 = vmatprep.subr.bf16.mxu1 %v588_v6  ;;  %v604_v16 = vpack.c.bf16 %v244_v15, %v243_v13  ;;  %v608_v19 = vpack.c.bf16 %v246_v18, %v245_v17  ;;  %v247_v20 = vld [vmem:[%s800_s4 + $0x30] sm:$0xff]  ;;  %v248_v21 = vld [vmem:[%s800_s4 + $0x38] sm:$0xff]  ;;  %v249_v23 = vld [vmem:[%s800_s4 + $0x40] sm:$0xff] }
   0x7   :  { %601 = vmatprep.subr.bf16.mxu0 %v600_v14  ;;  %v612_v22 = vpack.c.bf16 %v248_v21, %v247_v20  ;;  %v250_v24 = vld [vmem:[%s800_s4 + $0x48] sm:$0xff]  ;;  %v251_v26 = vld [vmem:[%s800_s4 + $0x50] sm:$0xff]  ;;  %v252_v27 = vld [vmem:[%s800_s4 + $0x58] sm:$0xff] }
   0x8   :  { %603 = vmatpush3.bf16.msra.mxu0 %v600_v14  ;;  %v616_v25 = vpack.c.bf16 %v250_v24, %v249_v23  ;;  %v620_v28 = vpack.c.bf16 %v252_v27, %v251_v26  ;;  %v253_v29 = vld [vmem:[%s800_s4 + $0x60] sm:$0xff]  ;;  %v254_v30 = vld [vmem:[%s800_s4 + $0x68] sm:$0xff]  ;;  %v25_v39 = vld [vmem:[%s799_s0 + $0x10] sm:$0xff] }
   0x9   :  { %591 = vmatpush3.bf16.msra.mxu1 %v588_v6  ;;  %605 = vmatprep.subr.bf16.mxu0 %v604_v16  ;;  %v624_v31 = vpack.c.bf16 %v254_v30, %v253_v29  ;;  %v24_v38 = vld [vmem:[%s799_s0 + $0x8] sm:$0xff]  ;;  %v26_v40 = vld [vmem:[%s799_s0 + $0x18] sm:$0xff]  ;;  %v255_v41 = vld [vmem:[%s800_s4 + $0x70] sm:$0xff] }
   0xa   :  { %v256_v42 = vld [vmem:[%s800_s4 + $0x78] sm:$0xff]  ;;  %v450_v44 = vld [vmem:[%s801_s3] ss:$0 sm:$0xff] }
   0xb   :  { %v628_v43 = vpack.c.bf16 %v256_v42, %v255_v41  ;;  %v455_v63 = vld [vmem:[%s802_s5] ss:$0 sm:$0xff] }
   0xc   :  { %513 = vmatmul.mubr.msk.f32.vlgmr.msra.gmra.mrb[0].mxu1 %vm35_vm0, %v28_v7  ;;  %607 = vmatpush3.bf16.msra.mxu0 %v604_v16 }
   0xd   :  { %515 = vmatprep.mubr.msk.f32.mxu1 %vm35_vm0, %v29_v8  ;;  %609 = vmatprep.subr.bf16.mxu0 %v608_v19 }
  0x10   :  { %516 = vmatmul.mubr.msk.f32.gmra.mrb[2].mxu1 %vm35_vm0, %v30_v9  ;;  %611 = vmatpush3.bf16.msra.mxu0 %v608_v19 }
  0x11   :  { %526 = vmatprep.mubr.msk.f32.mxu1 %vm35_vm0, %v23_v10  ;;  %613 = vmatprep.subr.bf16.mxu0 %v612_v22 }
  0x14   :  { %615 = vmatpush3.bf16.msra.mxu0 %v612_v22 }
  0x15   :  { %617 = vmatprep.subr.bf16.mxu0 %v616_v25 }
  0x18   :  { %619 = vmatpush3.bf16.msra.mxu0 %v616_v25 }
  0x19   :  { %621 = vmatprep.subr.bf16.mxu0 %v620_v28 }
  0x1c   :  { %623 = vmatpush3.bf16.msra.mxu0 %v620_v28 }
  0x1d   :  { %625 = vmatprep.subr.bf16.mxu0 %v624_v31 }
  0x20   :  { %627 = vmatpush3.bf16.msra.mxu0 %v624_v31 }
  0x21   :  { %629 = vmatprep.subr.bf16.mxu0 %v628_v43 }
  0x24   :  { %631 = vmatpush3.bf16.msra.mxu0 %v628_v43 }
  0xdf   :  { %v514_v32 = vpop.f32.mrb[0].mxu1 }
  0xe0   :  { %v114_v33 = vpop.f32.mrb[1].mxu1 }
  0xe1   :  { %v592_v34 = vpack.c.bf16 %v514_v32, %v114_v33 }
  0xe3   :  { %v517_v35 = vpop.f32.mrb[2].mxu1  ;;  %593 = vmatprep.subr.bf16.mxu1 %v592_v34 }
  0xe4   :  { %v124_v36 = vpop.f32.mrb[3].mxu1  ;;  %595 = vmatpush3.bf16.msra.mxu1 %v592_v34 }
  0xe5   :  { %v596_v37 = vpack.c.bf16 %v517_v35, %v124_v36 }
  0xe7   :  { %597 = vmatprep.subr.bf16.mxu1 %v596_v37 }
  0xe8   :  { %599 = vmatpush3.bf16.msra.mxu1 %v596_v37 }
  0xeb   :  { %527 = vmatmul.mubr.msk.f32.vlgmr.msra.gmra.mrb[4].mxu1 %vm35_vm0, %v24_v38 }
  0xec   :  { %529 = vmatprep.mubr.msk.f32.mxu1 %vm35_vm0, %v25_v39 }
  0xef   :  { %530 = vmatmul.mubr.msk.f32.gmra.mrb[6].mxu1 %vm35_vm0, %v26_v40 }
  0xf0   :  { %578 = vmatprep.mubr.msk.f32.mxu1 %vm35_vm0, %v23_v10 }
 0x1be   :  { %v528_v45 = vpop.f32.mrb[4].mxu1 }
 0x1bf   :  { %v224_v46 = vadd.f32 %v528_v45, %v450_v44  ;;  %v218_v47 = vpop.f32.mrb[5].mxu1 }
 0x1c0   :  { %v219_v48 = vadd.f32 %v450_v44, %v218_v47 }
 0x1c1   :  { %v238_v51 = vmax.f32 %v224_v46, 0.0 }
 0x1c2   :  { %v531_v49 = vpop.f32.mrb[6].mxu1  ;;  %v237_v50 = vmax.f32 %v219_v48, 0.0 }
 0x1c3   :  { %v234_v52 = vadd.f32 %v531_v49, %v450_v44  ;;  %v228_v53 = vpop.f32.mrb[7].mxu1 }
 0x1c4   :  { %v229_v54 = vadd.f32 %v450_v44, %v228_v53  ;;  %564 = vmatprep.mubr.f32.mxu0 %v237_v50 }
 0x1c5   :  { %565 = vmatmul.mubr.f32.vlgmr.msra.gmra.mrb[0].mxu0 %v238_v51  ;;  %v240_v56 = vmax.f32 %v234_v52, 0.0 }
 0x1c6   :  { %v239_v55 = vmax.f32 %v229_v54, 0.0 }
 0x1c8   :  { %567 = vmatprep.mubr.f32.mxu0 %v239_v55 }
 0x1c9   :  { %568 = vmatmul.mubr.f32.gmra.mrb[2].mxu0 %v240_v56 }
 0x298   :  { %v566_v57 = vpop.f32.mrb[0].mxu0 }
 0x299   :  { %v323_v58 = vpop.f32.mrb[1].mxu0 }
 0x29a   :  { %v632_v59 = vpack.c.bf16 %v566_v57, %v323_v58 }
 0x29c   :  { %v569_v60 = vpop.f32.mrb[2].mxu0  ;;  %633 = vmatprep.subr.bf16.mxu1 %v632_v59 }
 0x29d   :  { %v333_v61 = vpop.f32.mrb[3].mxu0  ;;  %635 = vmatpush3.bf16.msra.mxu1 %v632_v59 }
 0x29e   :  { %v636_v62 = vpack.c.bf16 %v569_v60, %v333_v61 }
 0x2a0   :  { %637 = vmatprep.subr.bf16.mxu1 %v636_v62 }
 0x2a1   :  { %639 = vmatpush3.bf16.msra.mxu1 %v636_v62 }
 0x2a4   :  { %579 = vmatmul.mubr.msk.f32.vlgmr.msra.gmra.mrb[8].mxu1 %vm35_vm0, %v24_v38 }
 0x2a5   :  { %581 = vmatprep.mubr.msk.f32.mxu1 %vm35_vm0, %v25_v39 }
 0x2a8   :  { %582 = vmatmul.mubr.msk.f32.gmra.mrb[10].mxu1 %vm35_vm0, %v26_v40 }
 0x377   :  { %v580_v0 = vpop.f32.mrb[8].mxu1 }
 0x378   :  { %v421_v1 = vadd.f32 %v580_v0, %v455_v63  ;;  %v415_v2 = vpop.f32.mrb[9].mxu1 }
 0x379   :  { %v416_v3 = vadd.f32 %v455_v63, %v415_v2 }
 0x37a   :  { %640 = vtanh.f32 %v421_v1 }
 0x37b   :  { %642 = vtanh.f32 %v416_v3  ;;  %v583_v4 = vpop.f32.mrb[10].mxu1 }
 0x37c   :  { %v431_v5 = vadd.f32 %v583_v4, %v455_v63  ;;  %v425_v6 = vpop.f32.mrb[11].mxu1 }
 0x37d   :  { %v426_v7 = vadd.f32 %v455_v63, %v425_v6 }
 0x37e   :  { %644 = vtanh.f32 %v431_v5 }
 0x37f   :  { %646 = vtanh.f32 %v426_v7 }
 0x384   :  { %v641_v8 = vpop.eup %640 }
 0x385   :  { %v643_v9 = vpop.eup %642  ;;  %439 = vst [vmem:[%s803_s6 + $0x8] sm:$0xff] %v641_v8 }
 0x386   :  { %438 = vst [vmem:[%s803_s6] sm:$0xff] %v643_v9 }
 0x388   :  { %v645_v10 = vpop.eup %644 }
 0x389   :  { %v647_v11 = vpop.eup %646  ;;  %441 = vst [vmem:[%s803_s6 + $0x18] sm:$0xff] %v645_v10 }
 0x38a   :  { %440 = vst [vmem:[%s803_s6 + $0x10] sm:$0xff] %v647_v11 }

// kernel: recurrent_formulation_net.54
= control target key start
LH: loop header
LB: loop body
LE: loop exit
PB: predicated region body
PF: predicated region fallthrough
CT: control target
= control target key end

     0   :  { %vm46_vm0 = vcmask 1042432   ;;  %vm33_vm1 = vcmask 89088   ;;  %vm637_vm2 = vmmov 1   ;;  %vm142_vm4 = vcmask 261120   ;;  %s777_s2 = inlined_call_operand.vmem [shape: f32[11,128], index: 2, kind: input, shape index: {}]   ;;  %s778_s1 = inlined_call_operand.vmem [shape: f32[32,11], index: 1, kind: input, shape index: {}]   ;;  %s779_s0 = inlined_call_operand.vmem [shape: f32[32,32], index: 0, kind: input, shape index: {}]   ;;  %s780_s4 = inlined_call_operand.vmem [shape: f32[128,128], index: 4, kind: input, shape index: {}]   ;;  %s781_s3 = inlined_call_operand.vmem [shape: f32[1,128], index: 3, kind: input, shape index: {}]   ;;  %s782_s5 = inlined_call_operand.vmem [shape: f32[1,128], index: 5, kind: input, shape index: {}]   ;;  %s783_s6 = inlined_call_operand.vmem [shape: f32[32,128], index: 6, kind: output, shape index: {}]  }
   0x1   :  { %v31_v0 = vld [vmem:[%s777_s2] sm:$0xff]  ;;  %v32_v1 = vld [vmem:[%s777_s2 + $0x8] sm:$0x7]  ;;  %vm583_vm3 = vmpackc.low %vm46_vm0, %vm637_vm2 }
   0x2   :  { %v582_v2 = vpack.c.bf16 %v32_v1, %v31_v0  ;;  %v27_v3 = vld [vmem:[%s778_s1] sm:$0xff]  ;;  %v28_v4 = vld [vmem:[%s778_s1 + $0x8] sm:$0xff]  ;;  %v29_v5 = vld [vmem:[%s778_s1 + $0x10] sm:$0xff] }
   0x3   :  { %510 = vmatprep.mubr.msk.f32.mxu1 %vm33_vm1, %v27_v3  ;;  %v30_v6 = vld [vmem:[%s778_s1 + $0x18] sm:$0xff]  ;;  %v23_v7 = vld [vmem:[%s779_s0] sm:$0xff]  ;;  %v245_v9 = vld [vmem:[%s780_s4 + $0x8] sm:$0xff] }
   0x4   :  { %584 = vmatprep.subr.msk.bf16.mxu1 %vm583_vm3, %v582_v2  ;;  %v244_v8 = vld [vmem:[%s780_s4] sm:$0xff]  ;;  %v246_v10 = vld [vmem:[%s780_s4 + $0x10] sm:$0xff]  ;;  %v247_v12 = vld [vmem:[%s780_s4 + $0x18] sm:$0xff] }
   0x5   :  { %587 = vmatpush3.bf16.msk.msra.mxu1 %vm583_vm3, %v582_v2  ;;  %v596_v11 = vpack.c.bf16 %v245_v9, %v244_v8  ;;  %v600_v13 = vpack.c.bf16 %v247_v12, %v246_v10  ;;  %v248_v14 = vld [vmem:[%s780_s4 + $0x20] sm:$0xff]  ;;  %v249_v15 = vld [vmem:[%s780_s4 + $0x28] sm:$0xff]  ;;  %v250_v17 = vld [vmem:[%s780_s4 + $0x30] sm:$0xff] }
   0x6   :  { %v604_v16 = vpack.c.bf16 %v249_v15, %v248_v14  ;;  %v251_v18 = vld [vmem:[%s780_s4 + $0x38] sm:$0xff]  ;;  %v252_v20 = vld [vmem:[%s780_s4 + $0x40] sm:$0xff]  ;;  %v253_v21 = vld [vmem:[%s780_s4 + $0x48] sm:$0xff] }
   0x7   :  { %597 = vmatprep.subr.bf16.mxu0 %v596_v11  ;;  %v608_v19 = vpack.c.bf16 %v251_v18, %v250_v17  ;;  %v612_v22 = vpack.c.bf16 %v253_v21, %v252_v20  ;;  %v254_v23 = vld [vmem:[%s780_s4 + $0x50] sm:$0xff]  ;;  %v255_v24 = vld [vmem:[%s780_s4 + $0x58] sm:$0xff]  ;;  %v256_v26 = vld [vmem:[%s780_s4 + $0x60] sm:$0xff] }
   0x8   :  { %511 = vmatmul.mubr.msk.f32.vlgmr.msra.gmra.mrb[0].mxu1 %vm33_vm1, %v28_v4  ;;  %599 = vmatpush3.bf16.msra.mxu0 %v596_v11  ;;  %v616_v25 = vpack.c.bf16 %v255_v24, %v254_v23  ;;  %v257_v27 = vld [vmem:[%s780_s4 + $0x68] sm:$0xff]  ;;  %v25_v36 = vld [vmem:[%s779_s0 + $0x10] sm:$0xff]  ;;  %v26_v37 = vld [vmem:[%s779_s0 + $0x18] sm:$0xff] }
   0x9   :  { %513 = vmatprep.mubr.msk.f32.mxu1 %vm33_vm1, %v29_v5  ;;  %601 = vmatprep.subr.bf16.mxu0 %v600_v13  ;;  %v620_v28 = vpack.c.bf16 %v257_v27, %v256_v26  ;;  %v24_v35 = vld [vmem:[%s779_s0 + $0x8] sm:$0xff]  ;;  %v258_v38 = vld [vmem:[%s780_s4 + $0x70] sm:$0xff]  ;;  %v259_v39 = vld [vmem:[%s780_s4 + $0x78] sm:$0xff] }
   0xa   :  { %v624_v40 = vpack.c.bf16 %v259_v39, %v258_v38  ;;  %v454_v41 = vld [vmem:[%s781_s3] ss:$0 sm:$0xff] }
   0xb   :  { %v459_v60 = vld [vmem:[%s782_s5] ss:$0 sm:$0xff] }
   0xc   :  { %514 = vmatmul.mubr.msk.f32.gmra.mrb[2].mxu1 %vm33_vm1, %v30_v6  ;;  %603 = vmatpush3.bf16.msra.mxu0 %v600_v13 }
   0xd   :  { %524 = vmatprep.mubr.msk.f32.mxu1 %vm142_vm4, %v23_v7  ;;  %605 = vmatprep.subr.bf16.mxu0 %v604_v16 }
  0x10   :  { %607 = vmatpush3.bf16.msra.mxu0 %v604_v16 }
  0x11   :  { %609 = vmatprep.subr.bf16.mxu0 %v608_v19 }
  0x14   :  { %611 = vmatpush3.bf16.msra.mxu0 %v608_v19 }
  0x15   :  { %613 = vmatprep.subr.bf16.mxu0 %v612_v22 }
  0x18   :  { %615 = vmatpush3.bf16.msra.mxu0 %v612_v22 }
  0x19   :  { %617 = vmatprep.subr.bf16.mxu0 %v616_v25 }
  0x1c   :  { %619 = vmatpush3.bf16.msra.mxu0 %v616_v25 }
  0x1d   :  { %621 = vmatprep.subr.bf16.mxu0 %v620_v28 }
  0x20   :  { %623 = vmatpush3.bf16.msra.mxu0 %v620_v28 }
  0x21   :  { %625 = vmatprep.subr.bf16.mxu0 %v624_v40 }
  0x24   :  { %627 = vmatpush3.bf16.msra.mxu0 %v624_v40 }
  0xdb   :  { %v512_v29 = vpop.f32.mrb[0].mxu1 }
  0xdc   :  { %v116_v30 = vpop.f32.mrb[1].mxu1 }
  0xdd   :  { %v588_v31 = vpack.c.bf16 %v512_v29, %v116_v30 }
  0xdf   :  { %v515_v32 = vpop.f32.mrb[2].mxu1  ;;  %589 = vmatprep.subr.bf16.mxu1 %v588_v31 }
  0xe0   :  { %v126_v33 = vpop.f32.mrb[3].mxu1  ;;  %591 = vmatpush3.bf16.msra.mxu1 %v588_v31 }
  0xe1   :  { %v592_v34 = vpack.c.bf16 %v515_v32, %v126_v33 }
  0xe3   :  { %593 = vmatprep.subr.bf16.mxu1 %v592_v34 }
  0xe4   :  { %595 = vmatpush3.bf16.msra.mxu1 %v592_v34 }
  0xe7   :  { %525 = vmatmul.mubr.msk.f32.vlgmr.msra.gmra.mrb[4].mxu1 %vm142_vm4, %v24_v35 }
  0xe8   :  { %527 = vmatprep.mubr.msk.f32.mxu1 %vm142_vm4, %v25_v36 }
  0xeb   :  { %528 = vmatmul.mubr.msk.f32.gmra.mrb[6].mxu1 %vm142_vm4, %v26_v37 }
  0xec   :  { %576 = vmatprep.mubr.msk.f32.mxu1 %vm142_vm4, %v23_v7 }
 0x1ba   :  { %v526_v42 = vpop.f32.mrb[4].mxu1 }
 0x1bb   :  { %v227_v43 = vadd.f32 %v526_v42, %v454_v41  ;;  %v221_v44 = vpop.f32.mrb[5].mxu1 }
 0x1bc   :  { %v222_v45 = vadd.f32 %v454_v41, %v221_v44 }
 0x1bd   :  { %v241_v48 = vmax.f32 %v227_v43, 0.0 }
 0x1be   :  { %v529_v46 = vpop.f32.mrb[6].mxu1  ;;  %v240_v47 = vmax.f32 %v222_v45, 0.0 }
 0x1bf   :  { %v237_v49 = vadd.f32 %v529_v46, %v454_v41  ;;  %v231_v50 = vpop.f32.mrb[7].mxu1 }
 0x1c0   :  { %v232_v51 = vadd.f32 %v454_v41, %v231_v50  ;;  %562 = vmatprep.mubr.f32.mxu0 %v240_v47 }
 0x1c1   :  { %563 = vmatmul.mubr.f32.vlgmr.msra.gmra.mrb[0].mxu0 %v241_v48  ;;  %v243_v53 = vmax.f32 %v237_v49, 0.0 }
 0x1c2   :  { %v242_v52 = vmax.f32 %v232_v51, 0.0 }
 0x1c4   :  { %565 = vmatprep.mubr.f32.mxu0 %v242_v52 }
 0x1c5   :  { %566 = vmatmul.mubr.f32.gmra.mrb[2].mxu0 %v243_v53 }
 0x294   :  { %v564_v54 = vpop.f32.mrb[0].mxu0 }
 0x295   :  { %v326_v55 = vpop.f32.mrb[1].mxu0 }
 0x296   :  { %v628_v56 = vpack.c.bf16 %v564_v54, %v326_v55 }
 0x298   :  { %v567_v57 = vpop.f32.mrb[2].mxu0  ;;  %629 = vmatprep.subr.bf16.mxu1 %v628_v56 }
 0x299   :  { %v336_v58 = vpop.f32.mrb[3].mxu0  ;;  %631 = vmatpush3.bf16.msra.mxu1 %v628_v56 }
 0x29a   :  { %v632_v59 = vpack.c.bf16 %v567_v57, %v336_v58 }
 0x29c   :  { %633 = vmatprep.subr.bf16.mxu1 %v632_v59 }
 0x29d   :  { %635 = vmatpush3.bf16.msra.mxu1 %v632_v59 }
 0x2a0   :  { %577 = vmatmul.mubr.msk.f32.vlgmr.msra.gmra.mrb[8].mxu1 %vm142_vm4, %v24_v35 }
 0x2a1   :  { %579 = vmatprep.mubr.msk.f32.mxu1 %vm142_vm4, %v25_v36 }
 0x2a4   :  { %580 = vmatmul.mubr.msk.f32.gmra.mrb[10].mxu1 %vm142_vm4, %v26_v37 }
 0x373   :  { %v578_v61 = vpop.f32.mrb[8].mxu1 }
 0x374   :  { %v424_v62 = vadd.f32 %v578_v61, %v459_v60  ;;  %v418_v63 = vpop.f32.mrb[9].mxu1 }
 0x375   :  { %v419_v0 = vadd.f32 %v459_v60, %v418_v63 }
 0x376   :  { %v438_v1 = vmax.f32 %v424_v62, 0.0 }
 0x377   :  { %v437_v2 = vmax.f32 %v419_v0, 0.0  ;;  %v581_v3 = vpop.f32.mrb[10].mxu1 }
 0x378   :  { %442 = vst [vmem:[%s783_s6 + $0x8] sm:$0xff] %v438_v1  ;;  %v434_v4 = vadd.f32 %v581_v3, %v459_v60  ;;  %v428_v5 = vpop.f32.mrb[11].mxu1 }
 0x379   :  { %441 = vst [vmem:[%s783_s6] sm:$0xff] %v437_v2  ;;  %v429_v6 = vadd.f32 %v459_v60, %v428_v5 }
 0x37a   :  { %v440_v7 = vmax.f32 %v434_v4, 0.0 }
 0x37b   :  { %v439_v8 = vmax.f32 %v429_v6, 0.0 }
 0x37c   :  { %444 = vst [vmem:[%s783_s6 + $0x18] sm:$0xff] %v440_v7 }
 0x37d   :  { %443 = vst [vmem:[%s783_s6 + $0x10] sm:$0xff] %v439_v8 }

// kernel: recurrent_formulation_net.66
= control target key start
LH: loop header
LB: loop body
LE: loop exit
PB: predicated region body
PF: predicated region fallthrough
CT: control target
= control target key end

     0   :  { %vm57_vm0 = vcmask 1045504   ;;  %vm44_vm1 = vcmask 48128   ;;  %s1059_s1 = inlined_call_operand.vmem [shape: f32[6,128], index: 1, kind: input, shape index: {}]   ;;  %s1060_s0 = inlined_call_operand.vmem [shape: f32[32,6], index: 0, kind: input, shape index: {}]   ;;  %s1061_s3 = inlined_call_operand.vmem [shape: f32[128,128], index: 3, kind: input, shape index: {}]   ;;  %s1062_s5 = inlined_call_operand.vmem [shape: f32[128,128], index: 5, kind: input, shape index: {}]   ;;  %s1063_s2 = inlined_call_operand.vmem [shape: f32[1,128], index: 2, kind: input, shape index: {}]   ;;  %s1064_s7 = inlined_call_operand.vmem [shape: f32[128,128], index: 7, kind: input, shape index: {}]   ;;  %s1065_s4 = inlined_call_operand.vmem [shape: f32[1,128], index: 4, kind: input, shape index: {}]   ;;  %s1066_s6 = inlined_call_operand.vmem [shape: f32[1,128], index: 6, kind: input, shape index: {}]   ;;  %s1067_s8 = inlined_call_operand.vmem [shape: f32[1,128], index: 8, kind: input, shape index: {}]   ;;  %s1068_s9 = inlined_call_operand.vmem [shape: f32[32,128], index: 9, kind: output, shape index: {}]  }
   0x1   :  { %v36_v0 = vld [vmem:[%s1059_s1] sm:$0x3f]  ;;  %v33_v2 = vld [vmem:[%s1060_s0 + $0x8] sm:$0xff]  ;;  %v34_v3 = vld [vmem:[%s1060_s0 + $0x10] sm:$0xff] }
   0x2   :  { %v32_v1 = vld [vmem:[%s1060_s0] sm:$0xff]  ;;  %580 = vmatprep.subr.msk.mxu0 %vm57_vm0, %v36_v0  ;;  %v155_v5 = vld [vmem:[%s1061_s3 + $0x8] sm:$0xff]  ;;  %v156_v6 = vld [vmem:[%s1061_s3 + $0x10] sm:$0xff] }
   0x3   :  { %582 = vmatprep.mubr.msk.f32.mxu0 %vm44_vm1, %v32_v1  ;;  %v154_v4 = vld [vmem:[%s1061_s3] sm:$0xff]  ;;  %581 = vmatpush3.msk.msra.mxu0 %vm57_vm0, %v36_v0  ;;  %v157_v7 = vld [vmem:[%s1061_s3 + $0x18] sm:$0xff]  ;;  %v159_v12 = vld [vmem:[%s1061_s3 + $0x28] sm:$0xff] }
   0x4   :  { %583 = vmatmul.mubr.msk.f32.vlgmr.msra.gmra.mrb[0].mxu0 %vm44_vm1, %v33_v2  ;;  %v702_v8 = vpack.c.bf16 %v155_v5, %v154_v4  ;;  %v706_v9 = vpack.c.bf16 %v157_v7, %v156_v6  ;;  %v35_v10 = vld [vmem:[%s1060_s0 + $0x18] sm:$0xff]  ;;  %v158_v11 = vld [vmem:[%s1061_s3 + $0x20] sm:$0xff]  ;;  %v160_v14 = vld [vmem:[%s1061_s3 + $0x30] sm:$0xff] }
   0x5   :  { %585 = vmatprep.mubr.msk.f32.mxu0 %vm44_vm1, %v34_v3  ;;  %v710_v13 = vpack.c.bf16 %v159_v12, %v158_v11  ;;  %v161_v15 = vld [vmem:[%s1061_s3 + $0x38] sm:$0xff]  ;;  %v162_v17 = vld [vmem:[%s1061_s3 + $0x40] sm:$0xff]  ;;  %v163_v18 = vld [vmem:[%s1061_s3 + $0x48] sm:$0xff] }
   0x6   :  { %703 = vmatprep.subr.bf16.mxu1 %v702_v8  ;;  %v714_v16 = vpack.c.bf16 %v161_v15, %v160_v14  ;;  %v718_v19 = vpack.c.bf16 %v163_v18, %v162_v17  ;;  %v164_v20 = vld [vmem:[%s1061_s3 + $0x50] sm:$0xff]  ;;  %v165_v21 = vld [vmem:[%s1061_s3 + $0x58] sm:$0xff]  ;;  %v166_v23 = vld [vmem:[%s1061_s3 + $0x60] sm:$0xff] }
   0x7   :  { %705 = vmatpush3.bf16.msra.mxu1 %v702_v8  ;;  %v722_v22 = vpack.c.bf16 %v165_v21, %v164_v20  ;;  %v167_v24 = vld [vmem:[%s1061_s3 + $0x68] sm:$0xff]  ;;  %v168_v26 = vld [vmem:[%s1061_s3 + $0x70] sm:$0xff]  ;;  %v169_v27 = vld [vmem:[%s1061_s3 + $0x78] sm:$0xff] }
   0x8   :  { %586 = vmatmul.mubr.msk.f32.gmra.mrb[2].mxu0 %vm44_vm1, %v35_v10  ;;  %707 = vmatprep.subr.bf16.mxu1 %v706_v9  ;;  %v726_v25 = vpack.c.bf16 %v167_v24, %v166_v23  ;;  %v730_v28 = vpack.c.bf16 %v169_v27, %v168_v26  ;;  %v270_v29 = vld [vmem:[%s1062_s5] sm:$0xff]  ;;  %v271_v30 = vld [vmem:[%s1062_s5 + $0x8] sm:$0xff]  ;;  %v272_v31 = vld [vmem:[%s1062_s5 + $0x10] sm:$0xff] }
   0x9   :  { %v734_v32 = vpack.c.bf16 %v271_v30, %v270_v29  ;;  %v273_v33 = vld [vmem:[%s1062_s5 + $0x18] sm:$0xff]  ;;  %v274_v35 = vld [vmem:[%s1062_s5 + $0x20] sm:$0xff]  ;;  %v275_v36 = vld [vmem:[%s1062_s5 + $0x28] sm:$0xff] }
   0xa   :  { %v738_v34 = vpack.c.bf16 %v273_v33, %v272_v31  ;;  %v742_v37 = vpack.c.bf16 %v275_v36, %v274_v35  ;;  %v276_v38 = vld [vmem:[%s1062_s5 + $0x30] sm:$0xff]  ;;  %v277_v39 = vld [vmem:[%s1062_s5 + $0x38] sm:$0xff]  ;;  %v278_v41 = vld [vmem:[%s1062_s5 + $0x40] sm:$0xff] }
   0xb   :  { %709 = vmatpush3.bf16.msra.mxu1 %v706_v9  ;;  %735 = vmatprep.subr.bf16.mxu0 %v734_v32  ;;  %v746_v40 = vpack.c.bf16 %v277_v39, %v276_v38  ;;  %v279_v42 = vld [vmem:[%s1062_s5 + $0x48] sm:$0xff]  ;;  %v280_v44 = vld [vmem:[%s1062_s5 + $0x50] sm:$0xff]  ;;  %v281_v45 = vld [vmem:[%s1062_s5 + $0x58] sm:$0xff] }
   0xc   :  { %711 = vmatprep.subr.bf16.mxu1 %v710_v13  ;;  %737 = vmatpush3.bf16.msra.mxu0 %v734_v32  ;;  %v750_v43 = vpack.c.bf16 %v279_v42, %v278_v41  ;;  %v754_v46 = vpack.c.bf16 %v281_v45, %v280_v44  ;;  %v506_v47 = vld [vmem:[%s1063_s2] ss:$0 sm:$0xff]  ;;  %v283_v1 = vld [vmem:[%s1062_s5 + $0x68] sm:$0xff]  ;;  %v284_v3 = vld [vmem:[%s1062_s5 + $0x70] sm:$0xff] }
   0xd   :  { %739 = vmatprep.subr.bf16.mxu0 %v738_v34  ;;  %v282_v0 = vld [vmem:[%s1062_s5 + $0x60] sm:$0xff]  ;;  %v285_v4 = vld [vmem:[%s1062_s5 + $0x78] sm:$0xff]  ;;  %v387_v7 = vld [vmem:[%s1064_s7 + $0x8] sm:$0xff] }
   0xe   :  { %v758_v2 = vpack.c.bf16 %v283_v1, %v282_v0  ;;  %v762_v5 = vpack.c.bf16 %v285_v4, %v284_v3  ;;  %v386_v6 = vld [vmem:[%s1064_s7] sm:$0xff]  ;;  %v388_v8 = vld [vmem:[%s1064_s7 + $0x10] sm:$0xff]  ;;  %v389_v10 = vld [vmem:[%s1064_s7 + $0x18] sm:$0xff] }
   0xf   :  { %713 = vmatpush3.bf16.msra.mxu1 %v710_v13  ;;  %v766_v9 = vpack.c.bf16 %v387_v7, %v386_v6  ;;  %v770_v11 = vpack.c.bf16 %v389_v10, %v388_v8  ;;  %v390_v12 = vld [vmem:[%s1064_s7 + $0x20] sm:$0xff]  ;;  %v391_v13 = vld [vmem:[%s1064_s7 + $0x28] sm:$0xff]  ;;  %v392_v15 = vld [vmem:[%s1064_s7 + $0x30] sm:$0xff] }
  0x10   :  { %715 = vmatprep.subr.bf16.mxu1 %v714_v16  ;;  %741 = vmatpush3.bf16.msra.mxu0 %v738_v34  ;;  %v774_v14 = vpack.c.bf16 %v391_v13, %v390_v12  ;;  %v394_v18 = vld [vmem:[%s1064_s7 + $0x40] sm:$0xff]  ;;  %v396_v21 = vld [vmem:[%s1064_s7 + $0x50] sm:$0xff]  ;;  %v399_v42 = vld [vmem:[%s1064_s7 + $0x68] sm:$0xff] }
  0x11   :  { %743 = vmatprep.subr.bf16.mxu0 %v742_v37  ;;  %v512_v24 = vld [vmem:[%s1065_s4] ss:$0 sm:$0xff]  ;;  %v400_v44 = vld [vmem:[%s1064_s7 + $0x70] sm:$0xff]  ;;  %v401_v45 = vld [vmem:[%s1064_s7 + $0x78] sm:$0xff] }
  0x12   :  { %v398_v41 = vld [vmem:[%s1064_s7 + $0x60] sm:$0xff] }
  0x13   :  { %717 = vmatpush3.bf16.msra.mxu1 %v714_v16  ;;  %v393_v16 = vld [vmem:[%s1064_s7 + $0x38] sm:$0xff]  ;;  %v514_v0 = vld [vmem:[%s1067_s8] ss:$0 sm:$0xff] }
  0x14   :  { %719 = vmatprep.subr.bf16.mxu1 %v718_v19  ;;  %745 = vmatpush3.bf16.msra.mxu0 %v742_v37  ;;  %v778_v17 = vpack.c.bf16 %v393_v16, %v392_v15 }
  0x15   :  { %747 = vmatprep.subr.bf16.mxu0 %v746_v40 }
  0x17   :  { %721 = vmatpush3.bf16.msra.mxu1 %v718_v19  ;;  %v395_v19 = vld [vmem:[%s1064_s7 + $0x48] sm:$0xff] }
  0x18   :  { %723 = vmatprep.subr.bf16.mxu1 %v722_v22  ;;  %749 = vmatpush3.bf16.msra.mxu0 %v746_v40  ;;  %v782_v20 = vpack.c.bf16 %v395_v19, %v394_v18 }
  0x19   :  { %751 = vmatprep.subr.bf16.mxu0 %v750_v43 }
  0x1b   :  { %725 = vmatpush3.bf16.msra.mxu1 %v722_v22  ;;  %v397_v22 = vld [vmem:[%s1064_s7 + $0x58] sm:$0xff] }
  0x1c   :  { %727 = vmatprep.subr.bf16.mxu1 %v726_v25  ;;  %753 = vmatpush3.bf16.msra.mxu0 %v750_v43  ;;  %v786_v23 = vpack.c.bf16 %v397_v22, %v396_v21  ;;  %v790_v43 = vpack.c.bf16 %v399_v42, %v398_v41 }
  0x1d   :  { %755 = vmatprep.subr.bf16.mxu0 %v754_v46 }
  0x1f   :  { %729 = vmatpush3.bf16.msra.mxu1 %v726_v25 }
  0x20   :  { %731 = vmatprep.subr.bf16.mxu1 %v730_v28  ;;  %757 = vmatpush3.bf16.msra.mxu0 %v754_v46  ;;  %v794_v46 = vpack.c.bf16 %v401_v45, %v400_v44 }
  0x21   :  { %759 = vmatprep.subr.bf16.mxu0 %v758_v2 }
  0x23   :  { %733 = vmatpush3.bf16.msra.mxu1 %v730_v28 }
  0x24   :  { %761 = vmatpush3.bf16.msra.mxu0 %v758_v2  ;;  %798 = vmatprep.subr.bf16.mxu1 %v766_v9 }
  0x25   :  { %763 = vmatprep.subr.bf16.mxu0 %v762_v5 }
  0x28   :  { %765 = vmatpush3.bf16.msra.mxu0 %v762_v5 }
  0x29   :  { %767 = vmatprep.subr.bf16.mxu0 %v766_v9 }
  0xd7   :  { %v584_v48 = vpop.f32.mrb[0].mxu0 }
  0xd8   :  { %v133_v49 = vadd.f32 %v584_v48, %v506_v47  ;;  %v127_v50 = vpop.f32.mrb[1].mxu0 }
  0xd9   :  { %v128_v51 = vadd.f32 %v506_v47, %v127_v50 }
  0xda   :  { %v147_v52 = vmul.f32 0.999995, %v133_v49 }
  0xdb   :  { %v587_v53 = vpop.f32.mrb[2].mxu0  ;;  %v146_v54 = vmul.f32 0.999995, %v128_v51 }
  0xdc   :  { %v143_v55 = vadd.f32 %v587_v53, %v506_v47  ;;  %v137_v56 = vpop.f32.mrb[3].mxu0  ;;  %v151_v59 = vmax.f32 %v147_v52, 0.0 }
  0xdd   :  { %v138_v57 = vadd.f32 %v506_v47, %v137_v56  ;;  %v150_v58 = vmax.f32 %v146_v54, 0.0  ;;  %v513_v47 = vld [vmem:[%s1066_s6] ss:$0 sm:$0xff] }
  0xde   :  { %v149_v60 = vmul.f32 0.999995, %v143_v55 }
  0xdf   :  { %v148_v61 = vmul.f32 0.999995, %v138_v57  ;;  %620 = vmatprep.mubr.f32.mxu1 %v150_v58 }
  0xe0   :  { %621 = vmatmul.mubr.f32.vlgmr.msra.gmra.mrb[0].mxu1 %v151_v59  ;;  %v153_v63 = vmax.f32 %v149_v60, 0.0 }
  0xe1   :  { %v152_v62 = vmax.f32 %v148_v61, 0.0  ;;  %806 = vmatpush3.bf16.msra.mxu1 %v766_v9 }
  0xe2   :  { %799 = vmatprep.subr.bf16.mxu1 %v770_v11 }
  0xe3   :  { %623 = vmatprep.mubr.f32.mxu1 %v152_v62 }
  0xe4   :  { %624 = vmatmul.mubr.f32.gmra.mrb[2].mxu1 %v153_v63 }
  0xe5   :  { %807 = vmatpush3.bf16.msra.mxu1 %v770_v11 }
  0xe6   :  { %800 = vmatprep.subr.bf16.mxu1 %v774_v14 }
  0xe9   :  { %808 = vmatpush3.bf16.msra.mxu1 %v774_v14 }
  0xea   :  { %801 = vmatprep.subr.bf16.mxu1 %v778_v17 }
  0xed   :  { %809 = vmatpush3.bf16.msra.mxu1 %v778_v17 }
  0xee   :  { %802 = vmatprep.subr.bf16.mxu1 %v782_v20 }
  0xf1   :  { %810 = vmatpush3.bf16.msra.mxu1 %v782_v20 }
  0xf2   :  { %803 = vmatprep.subr.bf16.mxu1 %v786_v23 }
  0xf5   :  { %811 = vmatpush3.bf16.msra.mxu1 %v786_v23 }
  0xf6   :  { %804 = vmatprep.subr.bf16.mxu1 %v790_v43 }
  0xf9   :  { %812 = vmatpush3.bf16.msra.mxu1 %v790_v43 }
  0xfa   :  { %805 = vmatprep.subr.bf16.mxu1 %v794_v46 }
  0xfd   :  { %813 = vmatpush3.bf16.msra.mxu1 %v794_v46 }
 0x1b3   :  { %v622_v25 = vpop.f32.mrb[0].mxu1 }
 0x1b4   :  { %v249_v26 = vadd.f32 %v622_v25, %v512_v24  ;;  %v243_v27 = vpop.f32.mrb[1].mxu1 }
 0x1b5   :  { %v244_v28 = vadd.f32 %v512_v24, %v243_v27 }
 0x1b6   :  { %v263_v29 = vmul.f32 0.999995, %v249_v26 }
 0x1b7   :  { %v262_v30 = vmul.f32 0.999995, %v244_v28  ;;  %v625_v31 = vpop.f32.mrb[2].mxu1 }
 0x1b8   :  { %v259_v32 = vadd.f32 %v625_v31, %v512_v24  ;;  %v253_v33 = vpop.f32.mrb[3].mxu1  ;;  %v267_v36 = vmax.f32 %v263_v29, 0.0 }
 0x1b9   :  { %v266_v34 = vmax.f32 %v262_v30, 0.0  ;;  %v254_v35 = vadd.f32 %v512_v24, %v253_v33 }
 0x1ba   :  { %v265_v37 = vmul.f32 0.999995, %v259_v32 }
 0x1bb   :  { %v264_v38 = vmul.f32 0.999995, %v254_v35  ;;  %658 = vmatprep.mubr.f32.mxu0 %v266_v34 }
 0x1bc   :  { %659 = vmatmul.mubr.f32.vlgmr.msra.gmra.mrb[4].mxu0 %v267_v36  ;;  %v269_v40 = vmax.f32 %v265_v37, 0.0 }
 0x1bd   :  { %v268_v39 = vmax.f32 %v264_v38, 0.0  ;;  %769 = vmatpush3.bf16.msra.mxu0 %v766_v9 }
 0x1be   :  { %771 = vmatprep.subr.bf16.mxu0 %v770_v11 }
 0x1bf   :  { %661 = vmatprep.mubr.f32.mxu0 %v268_v39 }
 0x1c0   :  { %662 = vmatmul.mubr.f32.gmra.mrb[6].mxu0 %v269_v40 }
 0x1c1   :  { %773 = vmatpush3.bf16.msra.mxu0 %v770_v11 }
 0x1c2   :  { %775 = vmatprep.subr.bf16.mxu0 %v774_v14 }
 0x1c5   :  { %777 = vmatpush3.bf16.msra.mxu0 %v774_v14 }
 0x1c6   :  { %779 = vmatprep.subr.bf16.mxu0 %v778_v17 }
 0x1c9   :  { %781 = vmatpush3.bf16.msra.mxu0 %v778_v17 }
 0x1ca   :  { %783 = vmatprep.subr.bf16.mxu0 %v782_v20 }
 0x1cd   :  { %785 = vmatpush3.bf16.msra.mxu0 %v782_v20 }
 0x1ce   :  { %787 = vmatprep.subr.bf16.mxu0 %v786_v23 }
 0x1d1   :  { %789 = vmatpush3.bf16.msra.mxu0 %v786_v23 }
 0x1d2   :  { %791 = vmatprep.subr.bf16.mxu0 %v790_v43 }
 0x1d5   :  { %793 = vmatpush3.bf16.msra.mxu0 %v790_v43 }
 0x1d6   :  { %795 = vmatprep.subr.bf16.mxu0 %v794_v46 }
 0x1d9   :  { %797 = vmatpush3.bf16.msra.mxu0 %v794_v46 }
 0x28f   :  { %v660_v48 = vpop.f32.mrb[4].mxu0 }
 0x290   :  { %v365_v49 = vadd.f32 %v660_v48, %v513_v47  ;;  %v359_v50 = vpop.f32.mrb[5].mxu0 }
 0x291   :  { %v360_v51 = vadd.f32 %v513_v47, %v359_v50 }
 0x292   :  { %v379_v52 = vmul.f32 0.999995, %v365_v49 }
 0x293   :  { %v378_v53 = vmul.f32 0.999995, %v360_v51  ;;  %v663_v54 = vpop.f32.mrb[6].mxu0 }
 0x294   :  { %v375_v55 = vadd.f32 %v663_v54, %v513_v47  ;;  %v369_v56 = vpop.f32.mrb[7].mxu0  ;;  %v383_v59 = vmax.f32 %v379_v52, 0.0 }
 0x295   :  { %v382_v57 = vmax.f32 %v378_v53, 0.0  ;;  %v370_v58 = vadd.f32 %v513_v47, %v369_v56 }
 0x296   :  { %v381_v60 = vmul.f32 0.999995, %v375_v55 }
 0x297   :  { %v380_v61 = vmul.f32 0.999995, %v370_v58  ;;  %696 = vmatprep.mubr.f32.mxu0 %v382_v57 }
 0x298   :  { %697 = vmatmul.mubr.f32.vlgmr.msra.gmra.mrb[8].mxu0 %v383_v59  ;;  %v385_v63 = vmax.f32 %v381_v60, 0.0 }
 0x299   :  { %v384_v62 = vmax.f32 %v380_v61, 0.0 }
 0x29b   :  { %699 = vmatprep.mubr.f32.mxu1 %v384_v62 }
 0x29c   :  { %700 = vmatmul.mubr.f32.vlgmr.msra.gmra.mrb[4].mxu1 %v385_v63 }
 0x36b   :  { %v698_v1 = vpop.f32.mrb[8].mxu0 }
 0x36c   :  { %v481_v2 = vadd.f32 %v698_v1, %v514_v0  ;;  %v475_v3 = vpop.f32.mrb[9].mxu0 }
 0x36d   :  { %v476_v4 = vadd.f32 %v514_v0, %v475_v3 }
 0x36e   :  { %814 = vtanh.f32 %v481_v2 }
 0x36f   :  { %816 = vtanh.f32 %v476_v4  ;;  %v701_v5 = vpop.f32.mrb[4].mxu1 }
 0x370   :  { %v491_v6 = vadd.f32 %v701_v5, %v514_v0  ;;  %v485_v7 = vpop.f32.mrb[5].mxu1 }
 0x371   :  { %v486_v8 = vadd.f32 %v514_v0, %v485_v7 }
 0x372   :  { %818 = vtanh.f32 %v491_v6 }
 0x373   :  { %820 = vtanh.f32 %v486_v8 }
 0x378   :  { %v815_v9 = vpop.eup %814 }
 0x379   :  { %v817_v10 = vpop.eup %816  ;;  %499 = vst [vmem:[%s1068_s9 + $0x8] sm:$0xff] %v815_v9 }
 0x37a   :  { %498 = vst [vmem:[%s1068_s9] sm:$0xff] %v817_v10 }
 0x37c   :  { %v819_v11 = vpop.eup %818 }
 0x37d   :  { %v821_v12 = vpop.eup %820  ;;  %501 = vst [vmem:[%s1068_s9 + $0x18] sm:$0xff] %v819_v11 }
 0x37e   :  { %500 = vst [vmem:[%s1068_s9 + $0x10] sm:$0xff] %v821_v12 }

</bundles_post_ra>
